<compile_context>
chip_gen: v6e
topology: v6e:2x2x1
jax: 0.10.0
libtpu: 0.0.40
codegen_flags: <defaults>
</compile_context>

<pallas_src>
import math

import jax
import jax.numpy as jnp
from jax import lax
from jax.experimental import pallas as pl
from jax.experimental.pallas import tpu as pltpu

LANE = 128


def _round_up(x, m):
    return ((x + m - 1) // m) * m


# ----------------------------------------------------------------------------
# Fused kernel: [one-hot gather @ block-diag table] -> [Linear+ReLU]*nlayers
#               -> Linear (lane-padded, bf16 output tile)
# ----------------------------------------------------------------------------
def _make_hypernet_kernel(nlayers: int, in_kernel_gather: bool, nfield: int, nfeat: int):
    def kernel(*refs):
        o_ref = refs[-1]

        if in_kernel_gather:
            ids_ref, table_ref = refs[0], refs[1]
            idx = 2
            ids = ids_ref[...]                                   # (block_b, nfield) i32
            bb = ids.shape[0]
            ncols = nfield * nfeat
            col = lax.broadcasted_iota(jnp.int32, (bb, ncols), 1)
            onehot = jnp.zeros((bb, ncols), jnp.float32)
            for f in range(nfield):                              # nfield is small; unrolled
                tgt = ids[:, f:f + 1] + (f * nfeat)              # (block_b, 1)
                onehot = onehot + (col == tgt).astype(jnp.float32)
            # Embedding gather == one-hot matmul against block-diagonal table.
            h = jnp.dot(onehot.astype(jnp.bfloat16), table_ref[...],
                        preferred_element_type=jnp.float32).astype(jnp.bfloat16)
        else:
            h = refs[0][...]                                     # (block_b, ninput) bf16
            idx = 1

        for _ in range(nlayers):
            w_ref, b_ref = refs[idx], refs[idx + 1]
            idx += 2
            # Linear (BN + bias folded into W/b), f32 accumulation on the MXU.
            h32 = jnp.dot(h, w_ref[...], preferred_element_type=jnp.float32) + b_ref[...]
            # ReLU (Dropout(p=0) is identity).
            h = jnp.maximum(h32, 0.0).astype(jnp.bfloat16)

        wo_ref, bo_ref = refs[idx], refs[idx + 1]
        y = jnp.dot(h, wo_ref[...], preferred_element_type=jnp.float32) + bo_ref[...]
        o_ref[...] = y.astype(o_ref.dtype)                       # bf16 lane-dense store

    return kernel


# ----------------------------------------------------------------------------
# Parameter init (mirrors the PyTorch module's shapes / init)
# ----------------------------------------------------------------------------
def init_params(key, nfield, nfeat, nemb, nlayers, nhid, L, K):
    noutput = L * K
    ninput = nfield * nemb
    keys = jax.random.split(key, 2 * (nlayers + 1) + 1)

    emb_bound = math.sqrt(6.0 / (nfeat + nemb))  # xavier_uniform_
    params = {
        "embedding": jax.random.uniform(
            keys[0], (nfeat, nemb), jnp.float32, -emb_bound, emb_bound
        ),
        "layers": [],
    }

    fan_in = ninput
    k_idx = 1
    for _ in range(nlayers):
        bound = 1.0 / math.sqrt(fan_in)
        W = jax.random.uniform(keys[k_idx], (fan_in, nhid), jnp.float32, -bound, bound)
        b = jax.random.uniform(keys[k_idx + 1], (1, nhid), jnp.float32, -bound, bound)
        k_idx += 2
        # bn rows: running_mean, running_var, gamma, beta (fresh BatchNorm1d)
        bn = jnp.stack(
            [
                jnp.zeros((nhid,), jnp.float32),
                jnp.ones((nhid,), jnp.float32),
                jnp.ones((nhid,), jnp.float32),
                jnp.zeros((nhid,), jnp.float32),
            ],
            axis=0,
        )
        params["layers"].append((W, b, bn))
        fan_in = nhid

    bound = 1.0 / math.sqrt(fan_in)
    Wo = jax.random.uniform(keys[k_idx], (fan_in, noutput), jnp.float32, -bound, bound)
    bo = jax.random.uniform(keys[k_idx + 1], (1, noutput), jnp.float32, -bound, bound)
    params["out"] = (Wo, bo)
    return params


# ----------------------------------------------------------------------------
# Host-side prepack: fold BN, lane-pad hidden/output widths, bf16 weights,
# build the block-diagonal embedding table for the in-kernel gather.
# ----------------------------------------------------------------------------
def pack_hypernet_params(params, *, nfield, nfeat, nemb, eps: float = 1e-5,
                         max_onehot_cols: int = 4096):
    nlayers = len(params["layers"])
    packed = {
        "embedding": params["embedding"],
        "layers": [],
        "nfield": nfield,
        "nfeat": nfeat,
        "nemb": nemb,
        "nlayers": nlayers,
    }

    ninput = nfield * nemb
    fan_in_pad = ninput                                  # first fan-in left unpadded
    for W, b, bn in params["layers"]:
        mean, var, gamma, beta = bn[0], bn[1], bn[2], bn[3]
        scale = gamma * lax.rsqrt(var + eps)
        W_f = W * scale[None, :]                                       # fold BN scale
        b_f = (b - mean[None, :]) * scale[None, :] + beta[None, :]     # fold BN shift
        nhid = W.shape[1]
        nhid_pad = _round_up(nhid, LANE)
        W_f = jnp.pad(W_f, ((0, fan_in_pad - W.shape[0]), (0, nhid_pad - nhid)))
        b_f = jnp.pad(b_f, ((0, 0), (0, nhid_pad - nhid)))
        packed["layers"].append((W_f.astype(jnp.bfloat16), b_f.astype(jnp.float32)))
        fan_in_pad = nhid_pad

    Wo, bo = params["out"]
    noutput = Wo.shape[1]
    nout_pad = _round_up(noutput, LANE)
    Wo_p = jnp.pad(Wo, ((0, fan_in_pad - Wo.shape[0]), (0, nout_pad - noutput)))
    bo_p = jnp.pad(bo, ((0, 0), (0, nout_pad - noutput)))
    packed["out"] = (Wo_p.astype(jnp.bfloat16), bo_p.astype(jnp.float32))
    packed["noutput"] = noutput
    packed["nout_pad"] = nout_pad

    # Block-diagonal embedding table for the in-kernel one-hot gather
    # (only when the one-hot width stays modest).
    ncols = nfield * nfeat
    if ncols <= max_onehot_cols:
        big = jnp.zeros((ncols, ninput), jnp.float32)
        for f in range(nfield):
            big = big.at[f * nfeat:(f + 1) * nfeat, f * nemb:(f + 1) * nemb].set(
                params["embedding"]
            )
        packed["big_table"] = big.astype(jnp.bfloat16)
    else:
        packed["big_table"] = None
    return packed


# ----------------------------------------------------------------------------
# Helpers
# ----------------------------------------------------------------------------
def _const_block_spec(shape):
    """Full-array resident block; single-buffered when the API supports it."""
    try:
        return pl.BlockSpec(shape, lambda i: (0, 0), pipeline_mode=pl.Buffered(1))
    except (TypeError, AttributeError):
        return pl.BlockSpec(shape, lambda i: (0, 0))


def _choose_block_b(B, max_block=1024):
    """Multiple of 128, <= max_block, aiming for >=4 grid steps (2 per v7x TC)."""
    b128 = _round_up(max(B, 1), LANE)
    target = (b128 // 4 // LANE) * LANE
    if target < LANE:
        target = LANE
    return max(LANE, min(max_block, b128, target))


def _vmem_capacity_bytes():
    try:
        return int(pltpu.get_tpu_info().vmem_capacity_bytes)
    except Exception:
        return 64 * 1024 * 1024  # conservative (v7x per-TC VMEM)


# ----------------------------------------------------------------------------
# Forward wrapper
# ----------------------------------------------------------------------------
def hypernet_forward(x_ids, packed, *, dropout: float = 0.0, block_b=None):
    """x_ids: int (B, nfield) -> float32 (B, L*K)."""
    assert dropout == 0.0, "kernel implements Dropout(p=0) (identity) only"

    B = x_ids.shape[0]
    nfield, nfeat, nemb = packed["nfield"], packed["nfeat"], packed["nemb"]
    nlayers = packed["nlayers"]
    ninput = nfield * nemb
    noutput, nout_pad = packed["noutput"], packed["nout_pad"]
    in_kernel_gather = packed["big_table"] is not None

    if block_b is None:
        block_b = _choose_block_b(B)
    assert block_b % 8 == 0, "block_b must be a multiple of 8 (sublane)"

    Wo, bo = packed["out"]
    w_bytes = sum(W.size * W.dtype.itemsize + b.size * b.dtype.itemsize
                  for W, b in packed["layers"])
    w_bytes += Wo.size * Wo.dtype.itemsize + bo.size * bo.dtype.itemsize
    if in_kernel_gather:
        w_bytes += packed["big_table"].size * packed["big_table"].dtype.itemsize

    first_row_bytes = nfield * 4 if in_kernel_gather else ninput * 2
    widths = [nfield * nfeat if in_kernel_gather else ninput, nout_pad]
    widths += [W.shape[1] for W, _ in packed["layers"]]
    max_width = max(widths)

    vmem_cap = _vmem_capacity_bytes()
    cap_budget = int(vmem_cap * 0.9)

    def vmem_need(bb):
        need = 2 * bb * first_row_bytes          # pipelined input tile (double buffered)
        need += 2 * bb * nout_pad * 2            # pipelined bf16 output tile
        need += 2 * w_bytes                      # weights (conservative: assume 2 bufs)
        need += 4 * bb * max_width * 4           # activation / one-hot temporaries
        need += 4 << 20                          # margin
        return need

    # Generation-aware clamp: shrink the batch tile until the estimate fits.
    while block_b > LANE and vmem_need(block_b) > cap_budget:
        block_b = max(LANE, ((block_b // 2) // LANE) * LANE)
    vmem_limit = int(min(max(vmem_need(block_b), 32 << 20), cap_budget))

    # Ragged-tail handling: zero-pad the batch to a multiple of block_b.
    B_pad = _round_up(B, block_b)
    if B_pad != B:
        x_ids = jnp.pad(x_ids, ((0, B_pad - B), (0, 0)))
    grid = (B_pad // block_b,)

    if in_kernel_gather:
        inputs = [x_ids.astype(jnp.int32), packed["big_table"]]
        in_specs = [
            pl.BlockSpec((block_b, nfield), lambda i: (i, 0)),
            _const_block_spec(packed["big_table"].shape),
        ]
    else:
        # TODO(synk): large-nfeat fallback keeps the gather in XLA (extra HBM
        # round trip); in-kernel scalar-prefetch DMA gather is a follow-up.
        x_flat = jnp.take(packed["embedding"], x_ids, axis=0).reshape(B_pad, ninput)
        inputs = [x_flat.astype(jnp.bfloat16)]
        in_specs = [pl.BlockSpec((block_b, ninput), lambda i: (i, 0))]

    for W, b in packed["layers"]:
        inputs += [W, b]
        in_specs += [_const_block_spec(W.shape), _const_block_spec(b.shape)]
    inputs += [Wo, bo]
    in_specs += [_const_block_spec(Wo.shape), _const_block_spec(bo.shape)]

    # Cost estimate for XLA's surrounding-op scheduler.
    flops = 0
    if in_kernel_gather:
        flops += 2 * B_pad * (nfield * nfeat) * ninput
    for W, _ in packed["layers"]:
        flops += 2 * B_pad * W.shape[0] * W.shape[1]
    flops += 2 * B_pad * Wo.shape[0] * Wo.shape[1]
    bytes_accessed = B_pad * first_row_bytes + B_pad * nout_pad * 2 + w_bytes

    y_pad = pl.pallas_call(
        _make_hypernet_kernel(nlayers, in_kernel_gather, nfield, nfeat),
        out_shape=jax.ShapeDtypeStruct((B_pad, nout_pad), jnp.bfloat16),
        grid=grid,
        in_specs=in_specs,
        out_specs=pl.BlockSpec((block_b, nout_pad), lambda i: (i, 0)),
        compiler_params=pltpu.CompilerParams(
            dimension_semantics=("parallel",),
            vmem_limit_bytes=vmem_limit,
        ),
        cost_estimate=pl.CostEstimate(
            flops=int(flops), transcendentals=0, bytes_accessed=int(bytes_accessed)
        ),
    )(*inputs)

    # Slice off batch / lane padding immediately; return f32 like the module.
    return y_pad[:B, :noutput].astype(jnp.float32)


# ----------------------------------------------------------------------------
# References
# ----------------------------------------------------------------------------
def reference_forward_f32(x_ids, params, *, nfield, nemb, eps=1e-5):
    """Pure-f32 JAX reference with original (unfolded) PyTorch semantics."""
    B = x_ids.shape[0]
    h = jnp.take(params["embedding"], x_ids, axis=0).reshape(B, nfield * nemb)
    for W, b, bn in params["layers"]:
        h = h @ W + b
        h = (h - bn[0]) * lax.rsqrt(bn[1] + eps) * bn[2] + bn[3]
        h = jnp.maximum(h, 0.0)
    Wo, bo = params["out"]
    return h @ Wo + bo


def reference_forward_packed(x_ids, packed):
    """Reference with the kernel's exact numerics (bf16 operands, f32 acc, bf16 out)."""
    B = x_ids.shape[0]
    nfield, nemb = packed["nfield"], packed["nemb"]
    table = packed["embedding"].astype(jnp.bfloat16)
    h = jnp.take(table, x_ids, axis=0).reshape(B, nfield * nemb)
    for W, b in packed["layers"]:
        h32 = jnp.dot(h, W, preferred_element_type=jnp.float32) + b
        h = jnp.maximum(h32, 0.0).astype(jnp.bfloat16)
    Wo, bo = packed["out"]
    y = jnp.dot(h, Wo, preferred_element_type=jnp.float32) + bo
    y = y.astype(jnp.bfloat16)
    return y[:, : packed["noutput"]].astype(jnp.float32)


if __name__ == "__main__":
    # Small shapes consistent with the module.
    nfield, nfeat, nemb = 4, 32, 8          # => mlp_ninput = 32
    nlayers, nhid, dropout = 2, 32, 0.0
    L, K = 4, 2                             # => noutput = 8
    B = 256

    key = jax.random.PRNGKey(0)
    kx, kp = jax.random.split(key)
    x_ids = jax.random.randint(kx, (B, nfield), 0, nfeat, dtype=jnp.int32)
    params = init_params(kp, nfield, nfeat, nemb, nlayers, nhid, L, K)
    packed = pack_hypernet_params(params, nfield=nfield, nfeat=nfeat, nemb=nemb)

    y = hypernet_forward(x_ids, packed, dropout=dropout)
    y = jax.block_until_ready(y)
    assert y.shape == (B, L * K), y.shape

    # Tight check vs. a reference with matching numerics (bf16 MXU, f32 acc, bf16 out).
    y_ref_packed = reference_forward_packed(x_ids, packed)
    assert jnp.allclose(y, y_ref_packed, atol=1e-2, rtol=1e-2), (
        "mismatch vs matched bf16 reference"
    )

    # Looser check vs. the full-f32 PyTorch-semantics reference.
    y_ref_f32 = reference_forward_f32(x_ids, params, nfield=nfield, nemb=nemb)
    assert jnp.allclose(y, y_ref_f32, atol=8e-2, rtol=8e-2), (
        "mismatch vs f32 reference"
    )

    print("KERNEL_OK")
</pallas_src>

<mosaic_0001>
module attributes {stable_mosaic.version = 11 : i64} {
  func.func @kernel(%arg0: i32, %arg1: memref<128x4xi32, #tpu.memory_space<vmem>>, %arg2: memref<128x32xbf16, #tpu.memory_space<vmem>>, %arg3: memref<32x128xbf16, #tpu.memory_space<vmem>>, %arg4: memref<1x128xf32, #tpu.memory_space<vmem>>, %arg5: memref<128x128xbf16, #tpu.memory_space<vmem>>, %arg6: memref<1x128xf32, #tpu.memory_space<vmem>>, %arg7: memref<128x128xbf16, #tpu.memory_space<vmem>>, %arg8: memref<1x128xf32, #tpu.memory_space<vmem>>, %arg9: memref<128x128xbf16, #tpu.memory_space<vmem>>) attributes {dimension_semantics = [#tpu.dimension_semantics<parallel>], iteration_bounds = array<i64: 2>, scalar_prefetch = 0 : i64, scratch_operands = 0 : i64, tpu.core_type = #tpu.core_type<tc>, window_params = [{transform_indices = @transform_0, window_bounds = array<i64: 128, 4>}, {pipeline_mode = #tpu.pipeline_mode<synchronous>, transform_indices = @transform_1, window_bounds = array<i64: 128, 32>}, {pipeline_mode = #tpu.pipeline_mode<synchronous>, transform_indices = @transform_2, window_bounds = array<i64: 32, 128>}, {pipeline_mode = #tpu.pipeline_mode<synchronous>, transform_indices = @transform_3, window_bounds = array<i64: 1, 128>}, {pipeline_mode = #tpu.pipeline_mode<synchronous>, transform_indices = @transform_4, window_bounds = array<i64: 128, 128>}, {pipeline_mode = #tpu.pipeline_mode<synchronous>, transform_indices = @transform_5, window_bounds = array<i64: 1, 128>}, {pipeline_mode = #tpu.pipeline_mode<synchronous>, transform_indices = @transform_6, window_bounds = array<i64: 128, 128>}, {pipeline_mode = #tpu.pipeline_mode<synchronous>, transform_indices = @transform_7, window_bounds = array<i64: 1, 128>}, {transform_indices = @transform_8, window_bounds = array<i64: 128, 128>}]} {
    %c0 = arith.constant 0 : index
    %c0_0 = arith.constant 0 : index
    %0 = vector.load %arg1[%c0, %c0_0] : memref<128x4xi32, #tpu.memory_space<vmem>>, vector<128x4xi32>
    %1 = tpu.iota {dimensions = array<i32: 1>} : vector<128x128xi32>
    %cst = arith.constant 0.000000e+00 : f32
    %2 = vector.broadcast %cst : f32 to vector<128x128xf32>
    %3 = vector.extract_strided_slice %0 {offsets = [0, 0], sizes = [128, 1], strides = [1, 1]} : vector<128x4xi32> to vector<128x1xi32>
    %c0_i32 = arith.constant 0 : i32
    %4 = vector.broadcast %c0_i32 : i32 to vector<128x1xi32>
    %5 = arith.addi %3, %4 : vector<128x1xi32>
    %6 = vector.broadcast %5 : vector<128x1xi32> to vector<128x128xi32>
    %7 = arith.cmpi eq, %1, %6 : vector<128x128xi32>
    %8 = arith.extui %7 : vector<128x128xi1> to vector<128x128xi32>
    %9 = arith.sitofp %8 : vector<128x128xi32> to vector<128x128xf32>
    %10 = arith.addf %2, %9 : vector<128x128xf32>
    %11 = vector.extract_strided_slice %0 {offsets = [0, 1], sizes = [128, 1], strides = [1, 1]} : vector<128x4xi32> to vector<128x1xi32>
    %c32_i32 = arith.constant 32 : i32
    %12 = vector.broadcast %c32_i32 : i32 to vector<128x1xi32>
    %13 = arith.addi %11, %12 : vector<128x1xi32>
    %14 = vector.broadcast %13 : vector<128x1xi32> to vector<128x128xi32>
    %15 = arith.cmpi eq, %1, %14 : vector<128x128xi32>
    %16 = arith.extui %15 : vector<128x128xi1> to vector<128x128xi32>
    %17 = arith.sitofp %16 : vector<128x128xi32> to vector<128x128xf32>
    %18 = arith.addf %10, %17 : vector<128x128xf32>
    %19 = vector.extract_strided_slice %0 {offsets = [0, 2], sizes = [128, 1], strides = [1, 1]} : vector<128x4xi32> to vector<128x1xi32>
    %c64_i32 = arith.constant 64 : i32
    %20 = vector.broadcast %c64_i32 : i32 to vector<128x1xi32>
    %21 = arith.addi %19, %20 : vector<128x1xi32>
    %22 = vector.broadcast %21 : vector<128x1xi32> to vector<128x128xi32>
    %23 = arith.cmpi eq, %1, %22 : vector<128x128xi32>
    %24 = arith.extui %23 : vector<128x128xi1> to vector<128x128xi32>
    %25 = arith.sitofp %24 : vector<128x128xi32> to vector<128x128xf32>
    %26 = arith.addf %18, %25 : vector<128x128xf32>
    %27 = vector.extract_strided_slice %0 {offsets = [0, 3], sizes = [128, 1], strides = [1, 1]} : vector<128x4xi32> to vector<128x1xi32>
    %c96_i32 = arith.constant 96 : i32
    %28 = vector.broadcast %c96_i32 : i32 to vector<128x1xi32>
    %29 = arith.addi %27, %28 : vector<128x1xi32>
    %30 = vector.broadcast %29 : vector<128x1xi32> to vector<128x128xi32>
    %31 = arith.cmpi eq, %1, %30 : vector<128x128xi32>
    %32 = arith.extui %31 : vector<128x128xi1> to vector<128x128xi32>
    %33 = arith.sitofp %32 : vector<128x128xi32> to vector<128x128xf32>
    %34 = arith.addf %26, %33 : vector<128x128xf32>
    %35 = arith.truncf %34 : vector<128x128xf32> to vector<128x128xbf16>
    %c0_1 = arith.constant 0 : index
    %c0_2 = arith.constant 0 : index
    %36 = vector.load %arg2[%c0_1, %c0_2] : memref<128x32xbf16, #tpu.memory_space<vmem>>, vector<128x32xbf16>
    %cst_3 = arith.constant dense<0.000000e+00> : vector<128x32xf32>
    %37 = tpu.matmul %35, %36, %cst_3 {dimension_numbers = #tpu.dot_dimension_numbers<[1], [0], [0], [1], [0, 0, 1, 1], [], []>} : vector<128x128xbf16>, vector<128x32xbf16>, vector<128x32xf32> -> vector<128x32xf32>
    %38 = arith.truncf %37 : vector<128x32xf32> to vector<128x32xbf16>
    %c0_4 = arith.constant 0 : index
    %c0_5 = arith.constant 0 : index
    %39 = vector.load %arg3[%c0_4, %c0_5] : memref<32x128xbf16, #tpu.memory_space<vmem>>, vector<32x128xbf16>
    %cst_6 = arith.constant dense<0.000000e+00> : vector<128x128xf32>
    %40 = tpu.matmul %38, %39, %cst_6 {dimension_numbers = #tpu.dot_dimension_numbers<[1], [0], [0], [1], [0, 0, 1, 1], [], []>} : vector<128x32xbf16>, vector<32x128xbf16>, vector<128x128xf32> -> vector<128x128xf32>
    %c0_7 = arith.constant 0 : index
    %c0_8 = arith.constant 0 : index
    %41 = vector.load %arg4[%c0_7, %c0_8] : memref<1x128xf32, #tpu.memory_space<vmem>>, vector<1x128xf32>
    %42 = vector.broadcast %41 : vector<1x128xf32> to vector<128x128xf32>
    %43 = arith.addf %40, %42 : vector<128x128xf32>
    %cst_9 = arith.constant 0.000000e+00 : f32
    %44 = vector.broadcast %cst_9 : f32 to vector<128x128xf32>
    %45 = arith.maximumf %43, %44 : vector<128x128xf32>
    %46 = arith.truncf %45 : vector<128x128xf32> to vector<128x128xbf16>
    %c0_10 = arith.constant 0 : index
    %c0_11 = arith.constant 0 : index
    %47 = vector.load %arg5[%c0_10, %c0_11] : memref<128x128xbf16, #tpu.memory_space<vmem>>, vector<128x128xbf16>
    %cst_12 = arith.constant dense<0.000000e+00> : vector<128x128xf32>
    %48 = tpu.matmul %46, %47, %cst_12 {dimension_numbers = #tpu.dot_dimension_numbers<[1], [0], [0], [1], [0, 0, 1, 1], [], []>} : vector<128x128xbf16>, vector<128x128xbf16>, vector<128x128xf32> -> vector<128x128xf32>
    %c0_13 = arith.constant 0 : index
    %c0_14 = arith.constant 0 : index
    %49 = vector.load %arg6[%c0_13, %c0_14] : memref<1x128xf32, #tpu.memory_space<vmem>>, vector<1x128xf32>
    %50 = vector.broadcast %49 : vector<1x128xf32> to vector<128x128xf32>
    %51 = arith.addf %48, %50 : vector<128x128xf32>
    %cst_15 = arith.constant 0.000000e+00 : f32
    %52 = vector.broadcast %cst_15 : f32 to vector<128x128xf32>
    %53 = arith.maximumf %51, %52 : vector<128x128xf32>
    %54 = arith.truncf %53 : vector<128x128xf32> to vector<128x128xbf16>
    %c0_16 = arith.constant 0 : index
    %c0_17 = arith.constant 0 : index
    %55 = vector.load %arg7[%c0_16, %c0_17] : memref<128x128xbf16, #tpu.memory_space<vmem>>, vector<128x128xbf16>
    %cst_18 = arith.constant dense<0.000000e+00> : vector<128x128xf32>
    %56 = tpu.matmul %54, %55, %cst_18 {dimension_numbers = #tpu.dot_dimension_numbers<[1], [0], [0], [1], [0, 0, 1, 1], [], []>} : vector<128x128xbf16>, vector<128x128xbf16>, vector<128x128xf32> -> vector<128x128xf32>
    %c0_19 = arith.constant 0 : index
    %c0_20 = arith.constant 0 : index
    %57 = vector.load %arg8[%c0_19, %c0_20] : memref<1x128xf32, #tpu.memory_space<vmem>>, vector<1x128xf32>
    %58 = vector.broadcast %57 : vector<1x128xf32> to vector<128x128xf32>
    %59 = arith.addf %56, %58 : vector<128x128xf32>
    %60 = arith.truncf %59 : vector<128x128xf32> to vector<128x128xbf16>
    %c0_21 = arith.constant 0 : index
    %c0_22 = arith.constant 0 : index
    %61 = vector.load %arg9[%c0_21, %c0_22] : memref<128x128xbf16, #tpu.memory_space<vmem>>, vector<128x128xbf16>
    tpu.vector_store %arg9[%c0_21, %c0_22], %60 {strides = array<i32>} : memref<128x128xbf16, #tpu.memory_space<vmem>>, vector<128x128xbf16>,
    return
  }
  func.func @transform_0(%arg0: i32) -> (i32, i32) {
    %c0_i32 = arith.constant 0 : i32
    %c0_i32_0 = arith.constant 0 : i32
    return %arg0, %c0_i32 : i32, i32
  }
  func.func @transform_1(%arg0: i32) -> (i32, i32) {
    %c0_i32 = arith.constant 0 : i32
    %c0_i32_0 = arith.constant 0 : i32
    %c0_i32_1 = arith.constant 0 : i32
    return %c0_i32, %c0_i32_0 : i32, i32
  }
  func.func @transform_2(%arg0: i32) -> (i32, i32) {
    %c0_i32 = arith.constant 0 : i32
    %c0_i32_0 = arith.constant 0 : i32
    %c0_i32_1 = arith.constant 0 : i32
    return %c0_i32, %c0_i32_0 : i32, i32
  }
  func.func @transform_3(%arg0: i32) -> (i32, i32) {
    %c0_i32 = arith.constant 0 : i32
    %c0_i32_0 = arith.constant 0 : i32
    %c0_i32_1 = arith.constant 0 : i32
    return %c0_i32, %c0_i32_0 : i32, i32
  }
  func.func @transform_4(%arg0: i32) -> (i32, i32) {
    %c0_i32 = arith.constant 0 : i32
    %c0_i32_0 = arith.constant 0 : i32
    %c0_i32_1 = arith.constant 0 : i32
    return %c0_i32, %c0_i32_0 : i32, i32
  }
  func.func @transform_5(%arg0: i32) -> (i32, i32) {
    %c0_i32 = arith.constant 0 : i32
    %c0_i32_0 = arith.constant 0 : i32
    %c0_i32_1 = arith.constant 0 : i32
    return %c0_i32, %c0_i32_0 : i32, i32
  }
  func.func @transform_6(%arg0: i32) -> (i32, i32) {
    %c0_i32 = arith.constant 0 : i32
    %c0_i32_0 = arith.constant 0 : i32
    %c0_i32_1 = arith.constant 0 : i32
    return %c0_i32, %c0_i32_0 : i32, i32
  }
  func.func @transform_7(%arg0: i32) -> (i32, i32) {
    %c0_i32 = arith.constant 0 : i32
    %c0_i32_0 = arith.constant 0 : i32
    %c0_i32_1 = arith.constant 0 : i32
    return %c0_i32, %c0_i32_0 : i32, i32
  }
  func.func @transform_8(%arg0: i32) -> (i32, i32) {
    %c0_i32 = arith.constant 0 : i32
    %c0_i32_0 = arith.constant 0 : i32
    return %arg0, %c0_i32 : i32, i32
  }
}

</mosaic_0001>

<bundles_post_ra>
// kernel: tpu_custom_call.1
= control target key start
LH: loop header
LB: loop body
LE: loop exit
PB: predicated region body
PF: predicated region fallthrough
CT: control target
= control target key end

     0   :  { %13 = vsyncpa [#allocation3], 0  ;;  %s2821_s0 = inlined_call_operand.vmem [shape: s32[256,4], index: 0, kind: input, shape index: {}]   ;;  %s2822_s1 = inlined_call_operand.vmem [shape: bf16[128,32], index: 1, kind: input, shape index: {}]   ;;  %s2823_s2 = inlined_call_operand.vmem [shape: bf16[32,128], index: 2, kind: input, shape index: {}]   ;;  %s2824_s3 = inlined_call_operand.vmem [shape: f32[1,128], index: 3, kind: input, shape index: {}]   ;;  %s2825_s4 = inlined_call_operand.vmem [shape: bf16[128,128], index: 4, kind: input, shape index: {}]   ;;  %s2826_s5 = inlined_call_operand.vmem [shape: f32[1,128], index: 5, kind: input, shape index: {}]   ;;  %s2827_s6 = inlined_call_operand.vmem [shape: bf16[128,128], index: 6, kind: input, shape index: {}]   ;;  %s2828_s7 = inlined_call_operand.vmem [shape: f32[1,128], index: 7, kind: input, shape index: {}]   ;;  %s2829_s8 = inlined_call_operand.hbm [shape: bf16[256,128], index: 8, kind: output, shape index: {}]  }
   0x1   :  { %15 = vsyncpa [#allocation3 + $0x1], 0  ;;  %s2280_s27 = smov 0   ;;  %s2282_s28 = smov 0  }
   0x2   :  { %s2284_s29 = smov 0   ;;  %s2286_s30 = smov 0  }
   0x3 LB: > { %s2301_s9 = sadd.s32 4294967295, %s2225_s30   ;;  %s1684_s10 = sadd.s32 4294967294, %s2225_s30   ;;  %s2225_s30 = sphi %s2286_s30, %s2835_s30   ;;  %s2221_s29 = sphi %s2284_s29, %s2834_s29   ;;  %s2217_s28 = sphi %s2282_s28, %s2833_s28   ;;  %s2213_s27 = sphi %s2280_s27, %s2832_s27  }
   0x4   : > { %s2305_s11 = sadd.s32 1, %s2225_s30   ;;  %s201_s12 = sadd.s32 1, %s2221_s29 }
   0x5   : > { %s198_s13 = ssub.s32 %s2225_s30, %s2305_s11  ;;  %p211_p0 = scmp.ne.s32.totalorder %s2221_s29, %s2217_s28 }
   0x6   : > { %p199_p1 = scmp.eq.s32.totalorder %s198_s13, 0  ;;  %p212_p2 = scmp.eq.s32.totalorder %s2301_s9, 1 }
   0x7   : > { %p217_p3 = scmp.ne.s32.totalorder %s2217_s28, %s2213_s27  ;;  %p218_p4 = scmp.eq.s32.totalorder %s1684_s10, 1 }
   0x8   : > { %s2316_s14 = scalar_select %p199_p1, %s2221_s29, %s201_s12  }
   0x9   : > { %p2318_p5 = por %p212_p2, %p211_p0  ;;  %p2322_p6 = por %p218_p4, %p217_p3 }
   0xa   : > { %p1687_p7 = scmp.ge.s32.totalorder %s2225_s30, 1  ;;  %p266_p8 = scmp.lt.s32.totalorder %s2225_s30, 3 }
   0xc   : > { %p267_p9 = pnand %p1687_p7, %p266_p8 }
   0xd   : > { %s1689_s17 = sshll.u32 (!%p267_p9), %s2301_s9, 4  ;;  %s297_s26 = sand.u32 (!%p267_p9), 1, %s2217_s28  }
   0xe   : > { %270 = sbr.rel (%p267_p9) target bundleno = 1157 (0x485), region = 52  ;;  %p301_p10 = scmp.lt.s32.totalorder (!%p267_p9), %s1689_s17, 31 }
   0xf   : > { %s1688_s13 = sshll.u32 (!%p267_p9), %s297_s26, 6  ;;  %s2232_s25 = smov (!%p267_p9), [#allocation2]  }
  0x13   : > { %v2227_v0 = vmov 0   ;;  %s2837_s17 = smov (!%p301_p10, %s1689_s17), 31  ;;  %v2228_v5 = vmov 1   ;;  %v2229_v14 = vmov 2   ;;  %v2230_v20 = vmov 3   ;;  %v2139_v27 = vld [vmem:[%s2822_s1 + $0x38] sm:$0xff]  }
  0x14   : > { %2114 = vset.pattern.permute.xlu1 %v2227_v0  ;;  %2113 = vset.pattern.permute.xlu0 %v2227_v0  ;;  %s1690_s18 = sshll.u32 %s2837_s17, 3  ;;  %v2140_v30 = vld [vmem:[%s2822_s1 + $0x30] sm:$0xff]   ;;  %v2141_v33 = vld [vmem:[%s2822_s1 + $0x28] sm:$0xff]   ;;  %v2142_v36 = vld [vmem:[%s2822_s1 + $0x20] sm:$0xff]   ;;  %s2760_s17 = scalar_lea.vmem [#allocation2], %s1688_s13 }
  0x15   : > { %s2334_s21 = scalar_lea.vmem %s2821_s0, %s1690_s18  ;;  %1935 = vmatprep.subr.bf16.mxu0 %v2139_v27  ;;  %v2143_v38 = vld [vmem:[%s2822_s1 + $0x18] sm:$0xff]   ;;  %v2144_v41 = vld [vmem:[%s2822_s1 + $0x10] sm:$0xff]   ;;  %v2145_v44 = vld [vmem:[%s2822_s1 + $0x8] sm:$0xff]   ;;  %s1829_s18 = sshll.u32 %s2301_s9, 10 }
  0x16   : > { %v2337_v1 = vld [vmem:[%s2334_s21 + $0x18] sm:$0xff]  ;;  %v2340_v2 = vld [vmem:[%s2334_s21] sm:$0xff]  ;;  %v309_v3 = vld [vmem:[%s2334_s21 + $0x8] sm:$0xff]  ;;  %1936 = vmatpush3.bf16.msra.mxu0 %v2139_v27  ;;  %s1622_s19 = sshll.u32 %s2760_s17, 4  ;;  %s2773_s23 = scalar_lea.hbm %s2829_s8, %s1829_s18  ;;  %s2775_s19 = int_to_ptr.vmem [resolvable:$true] %s1622_s19 }
  0x17   : > { %336 = vperm.xlu1 %2114, %v2337_v1   ;;  %327 = vperm.xlu0 %2113, %v2340_v2   ;;  %v438_v4 = vadd.s32 32, %v2340_v2  ;;  %v310_v6 = vld [vmem:[%s2334_s21 + $0x10] sm:$0xff]  ;;  %v439_v7 = vadd.s32 32, %v309_v3  ;;  %v2349_v8 = vld [vmem:[%s2334_s21 + $0x28] sm:$0xff]  ;;  %v441_v9 = vadd.s32 32, %v2337_v1  ;;  %v566_v11 = vadd.s32 64, %v2340_v2 }
  0x18   : > { %v2353_v10 = vld [vmem:[%s2334_s21 + $0x30] sm:$0xff]  ;;  %v2358_v12 = vld [vmem:[%s2334_s21 + $0x48] sm:$0xff]  ;;  %v568_v13 = vadd.s32 64, %v310_v6  ;;  %v569_v16 = vadd.s32 64, %v2337_v1  ;;  %v695_v18 = vadd.s32 96, %v309_v3  ;;  %v696_v21 = vadd.s32 96, %v310_v6  ;;  %1937 = vmatprep.subr.bf16.mxu0 %v2140_v30 }
  0x19   : > { %v2364_v15 = vld [vmem:[%s2334_s21 + $0x50] sm:$0xff]  ;;  %v2369_v17 = vld [vmem:[%s2334_s21 + $0x68] sm:$0xff]  ;;  %v440_v22 = vadd.s32 32, %v310_v6  ;;  %v2379_v23 = vld [vmem:[%s2334_s21 + $0x20] sm:$0xff]  ;;  %v444_v24 = vadd.s32 32, %v2353_v10  ;;  %v443_v29 = vadd.s32 32, %v2349_v8 }
  0x1a   : > { %v2373_v19 = vld [vmem:[%s2334_s21 + $0x70] sm:$0xff]  ;;  %v448_v25 = vadd.s32 32, %v2364_v15  ;;  %v442_v26 = vadd.s32 32, %v2379_v23  ;;  %v567_v31 = vadd.s32 64, %v309_v3  ;;  %v315_v32 = vld [vmem:[%s2334_s21 + $0x38] sm:$0xff]  ;;  %1938 = vmatpush3.bf16.msra.mxu0 %v2140_v30  ;;  %v571_v34 = vadd.s32 64, %v2349_v8 }
  0x1b   : > { %2115 = vset.pattern.permute.xlu1 %v2228_v5  ;;  %330 = vperm.xlu0 %2113, %v309_v3   ;;  %v452_v28 = vadd.s32 32, %v2373_v19  ;;  %v445_v35 = vadd.s32 32, %v315_v32  ;;  %v575_v37 = vadd.s32 64, %v2358_v12  ;;  %v570_v39 = vadd.s32 64, %v2379_v23  ;;  %v2146_v47 = vld [vmem:[%s2822_s1] sm:$0xff]   ;;  %v319_v54 = vld [vmem:[%s2334_s21 + $0x58] sm:$0xff] }
  0x1c   : > { %455 = vperm.xlu1 %2115, %v438_v4   ;;  %1939 = vmatprep.subr.bf16.mxu0 %v2141_v33  ;;  %v579_v40 = vadd.s32 64, %v2369_v17  ;;  %v572_v42 = vadd.s32 64, %v2353_v10  ;;  %v694_v43 = vadd.s32 96, %v2340_v2  ;;  %v573_v45 = vadd.s32 64, %v315_v32  ;;  %v316_v52 = vld [vmem:[%s2334_s21 + $0x40] sm:$0xff]  ;;  %v323_v60 = vld [vmem:[%s2334_s21 + $0x78] sm:$0xff] }
  0x1d   : > { %v697_v46 = vadd.s32 96, %v2337_v1  ;;  %v699_v48 = vadd.s32 96, %v2349_v8  ;;  %v698_v49 = vadd.s32 96, %v2379_v23  ;;  %v700_v50 = vadd.s32 96, %v2353_v10  ;;  %v320_v57 = vld [vmem:[%s2334_s21 + $0x60] sm:$0xff]  ;;  %s2781_s9 = scalar_lea.sflag [#allocation3], %s297_s26 }
  0x1e   : > { %1940 = vmatpush3.bf16.msra.mxu0 %v2141_v33  ;;  %v701_v51 = vadd.s32 96, %v315_v32  ;;  %v702_v53 = vadd.s32 96, %v316_v52  ;;  %v446_v55 = vadd.s32 32, %v316_v52  ;;  %v705_v56 = vadd.s32 96, %v319_v54  ;;  %s2165_s24 = scalar_lea.vmem %s2775_s19, 1024  ;;  %s2169_s21 = sshll.u32 %s2232_s25, 4  ;;  %s2170_s21 = int_to_ptr.vmem [resolvable:$false] %s2169_s21 }
  0x1f   : > { %333 = vperm.xlu0 %2113, %v310_v6   ;;  %1941 = vmatprep.subr.bf16.mxu0 %v2142_v36  ;;  %v447_v58 = vadd.s32 32, %v2358_v12  ;;  %v706_v59 = vadd.s32 96, %v320_v57  ;;  %v709_v61 = vadd.s32 96, %v323_v60  ;;  %v449_v62 = vadd.s32 32, %v319_v54  ;;  %p2166_p11 = scmp.ne.s32.totalorder %s2775_s19, %s2165_s24  ;;  %s2171_s10 = scalar_lea.vmem %s2170_s21, 2048 }
  0x20   : > { %458 = vperm.xlu1 %2115, %v439_v7   ;;  %v574_v63 = vadd.s32 64, %v316_v52  ;;  %v576_v1 = vadd.s32 64, %v2364_v15  ;;  %v577_v2 = vadd.s32 64, %v319_v54  ;;  %v703_v3 = vadd.s32 96, %v2358_v12  ;;  %p2172_p0 = scmp.lt.s32.totalorder %s2775_s19, %s2170_s21  ;;  %p2173_p1 = scmp.lt.s32.totalorder %s2171_s10, %s2165_s24 }
  0x21   : > { %v704_v7 = vadd.s32 96, %v2364_v15  ;;  %p2167_p12 = pnand %p2166_p11, %p2318_p5 }
  0x22   : > { %1942 = vmatpush3.bf16.msra.mxu0 %v2142_v36  ;;  %p2174_p2 = por %p2173_p1, %p2172_p0 }
  0x23   : > { %342 = vperm.xlu0 %2113, %v2349_v8   ;;  %1943 = vmatprep.subr.bf16.mxu0 %v2143_v38  ;;  %p2168_p13 = pneg %p2167_p12 }
  0x24   : > { %464 = vperm.xlu1 %2115, %v441_v9  }
  0x25   : > { %p2175_p3 = pnand %p2174_p2, %p2168_p13 }
  0x26   : > { %1944 = vmatpush3.bf16.msra.mxu0 %v2143_v38 }
  0x27   : > { %345 = vperm.xlu0 %2113, %v2353_v10   ;;  %1945 = vmatprep.subr.bf16.mxu0 %v2144_v41 }
  0x28   : > { %2116 = vset.pattern.permute.xlu1 %v2229_v14 }
  0x29   : > { %583 = vperm.xlu1 %2116, %v566_v11  }
  0x2a   : > { %1946 = vmatpush3.bf16.msra.mxu0 %v2144_v41  ;;  %v708_v41 = vadd.s32 96, %v2373_v19 }
  0x2b   : > { %354 = vperm.xlu0 %2113, %v2358_v12   ;;  %1947 = vmatprep.subr.bf16.mxu0 %v2145_v44  ;;  %v450_v12 = vadd.s32 32, %v320_v57 }
  0x2d   : > { %589 = vperm.xlu1 %2116, %v568_v13  }
  0x2e   : > { %1948 = vmatpush3.bf16.msra.mxu0 %v2145_v44 }
  0x2f   : > { %357 = vperm.xlu0 %2113, %v2364_v15   ;;  %1949 = vmatprep.subr.bf16.mxu0 %v2146_v47  ;;  %v451_v15 = vadd.s32 32, %v2369_v17 }
  0x31   : > { %592 = vperm.xlu1 %2116, %v569_v16  }
  0x32   : > { %1950 = vmatpush3.bf16.msra.mxu0 %v2146_v47 }
  0x33   : > { %366 = vperm.xlu0 %2113, %v2369_v17  }
  0x35   : > { %2117 = vset.pattern.permute.xlu1 %v2230_v20 }
  0x36   : > { %714 = vperm.xlu1 %2117, %v695_v18  }
  0x37   : > { %369 = vperm.xlu0 %2113, %v2373_v19  }
  0x3a   : > { %717 = vperm.xlu1 %2117, %v696_v21  }
  0x3b   : > { %2132 = vset.pattern.permute.xlu0 %v2228_v5 }
  0x3c   : > { %461 = vperm.xlu0 %2132, %v440_v22  }
  0x3e   : > { %2118 = vset.pattern.permute.xlu1 %v2227_v0 }
  0x3f   : > { %339 = vperm.xlu1 %2118, %v2379_v23  }
  0x40   : > { %473 = vperm.xlu0 %2132, %v444_v24  }
  0x43   : > { %2119 = vset.pattern.permute.xlu1 %v2228_v5 }
  0x44   : > { %485 = vperm.xlu0 %2132, %v448_v25   ;;  %467 = vperm.xlu1 %2119, %v442_v26   ;;  %v453_v25 = vadd.s32 32, %v323_v60 }
  0x48   : > { %497 = vperm.xlu0 %2132, %v452_v28   ;;  %470 = vperm.xlu1 %2119, %v443_v29   ;;  %v578_v28 = vadd.s32 64, %v320_v57 }
  0x4c   : > { %2134 = vset.pattern.permute.xlu0 %v2229_v14  ;;  %2120 = vset.pattern.permute.xlu1 %v2227_v0 }
  0x4d   : > { %586 = vperm.xlu0 %2134, %v567_v31   ;;  %348 = vperm.xlu1 %2120, %v315_v32   ;;  %v324_v32 = vlaneseq }
  0x51   : > { %598 = vperm.xlu0 %2134, %v571_v34   ;;  %2121 = vset.pattern.permute.xlu1 %v2228_v5  ;;  %v581_v34 = vadd.s32 64, %v323_v60 }
  0x52   : > { %476 = vperm.xlu1 %2121, %v445_v35   ;;  %v2483_v35 = vand.u32 127, %v324_v32 }
  0x55   : > { %610 = vperm.xlu0 %2134, %v575_v37   ;;  %v2231_v37 = vmov 0.0  }
  0x56   : > { %2122 = vset.pattern.permute.xlu1 %v2229_v14 }
  0x57   : > { %595 = vperm.xlu1 %2122, %v570_v39  }
  0x59   : > { %622 = vperm.xlu0 %2134, %v579_v40  }
  0x5b   : > { %601 = vperm.xlu1 %2122, %v572_v42  }
  0x5d   : > { %2137 = vset.pattern.permute.xlu0 %v2230_v20 }
  0x5e   : > { %711 = vperm.xlu0 %2137, %v694_v43  }
  0x5f   : > { %604 = vperm.xlu1 %2122, %v573_v45  }
  0x62   : > { %720 = vperm.xlu0 %2137, %v697_v46  }
  0x63   : > { %2123 = vset.pattern.permute.xlu1 %v2230_v20 }
  0x64   : > { %726 = vperm.xlu1 %2123, %v699_v48  }
  0x66   : > { %723 = vperm.xlu0 %2137, %v698_v49  }
  0x68   : > { %729 = vperm.xlu1 %2123, %v700_v50  }
  0x6a   : > { %732 = vperm.xlu0 %2137, %v701_v51  }
  0x6c   : > { %2124 = vset.pattern.permute.xlu1 %v2227_v0 }
  0x6d   : > { %351 = vperm.xlu1 %2124, %v316_v52  }
  0x6e   : > { %735 = vperm.xlu0 %2137, %v702_v53  }
  0x71   : > { %2125 = vset.pattern.permute.xlu1 %v2228_v5 }
  0x72   : > { %479 = vperm.xlu1 %2125, %v446_v55   ;;  %744 = vperm.xlu0 %2137, %v705_v56  }
  0x76   : > { %482 = vperm.xlu1 %2125, %v447_v58   ;;  %747 = vperm.xlu0 %2137, %v706_v59  }
  0x7a   : > { %2126 = vset.pattern.permute.xlu1 %v2227_v0  ;;  %756 = vperm.xlu0 %2137, %v709_v61  }
  0x7b   : > { %360 = vperm.xlu1 %2126, %v319_v54  }
  0x7f   : > { %2127 = vset.pattern.permute.xlu1 %v2228_v5 }
  0x80   : > { %488 = vperm.xlu1 %2127, %v449_v62  }
  0x84   : > { %2128 = vset.pattern.permute.xlu1 %v2229_v14 }
  0x85   : > { %607 = vperm.xlu1 %2128, %v574_v63  }
  0x89   : > { %613 = vperm.xlu1 %2128, %v576_v1  }
  0x8d   : > { %616 = vperm.xlu1 %2128, %v577_v2  }
  0x91   : > { %2129 = vset.pattern.permute.xlu1 %v2230_v20 }
  0x92   : > { %v2443_v4 = vpop.permute.xlu1 %336  ;;  %738 = vperm.xlu1 %2129, %v703_v3   ;;  %v2445_v6 = vpop.permute.xlu0 %327 }
  0x93   : > { %vm374_vm4 = vcmp.eq.s32.totalorder %v2483_v35, %v2445_v6  ;;  %vm377_vm10 = vcmp.eq.s32.totalorder %v2483_v35, %v2443_v4 }
  0x94   : > { %v1691_v51 = vsel %vm374_vm4, 1.0, %v2231_v37  ;;  %v1694_v58 = vsel %vm377_vm10, 1.0, %v2231_v37 }
  0x96   : > { %741 = vperm.xlu1 %2129, %v704_v7   ;;  %v2448_v8 = vpop.permute.xlu0 %330 }
  0x97   : > { %v2450_v9 = vpop.permute.xlu1 %455  ;;  %vm375_vm5 = vcmp.eq.s32.totalorder %v2483_v35, %v2448_v8 }
  0x98   : > { %vm502_vm6 = vcmp.eq.s32.totalorder %v2483_v35, %v2450_v9  ;;  %v1692_v52 = vsel %vm375_vm5, 1.0, %v2231_v37 }
  0x99   : > { %v1707_v53 = vsel %vm502_vm6, 1.0, %v2231_v37 }
  0x9a   : > { %2130 = vset.pattern.permute.xlu1 %v2227_v0  ;;  %v2453_v10 = vpop.permute.xlu0 %333  ;;  %v550_v61 = vadd.f32 %v1707_v53, %v1691_v51 }
  0x9b   : > { %363 = vperm.xlu1 %2130, %v320_v57   ;;  %v2455_v11 = vpop.permute.xlu1 %458  ;;  %vm376_vm7 = vcmp.eq.s32.totalorder %v2483_v35, %v2453_v10 }
  0x9c   : > { %vm503_vm8 = vcmp.eq.s32.totalorder %v2483_v35, %v2455_v11  ;;  %v1693_v54 = vsel %vm376_vm7, 1.0, %v2231_v37 }
  0x9d   : > { %v1708_v55 = vsel %vm503_vm8, 1.0, %v2231_v37 }
  0x9e   : > { %v2457_v13 = vpop.permute.xlu0 %342  ;;  %v551_v62 = vadd.f32 %v1708_v55, %v1692_v52 }
  0x9f   : > { %2131 = vset.pattern.permute.xlu1 %v2228_v5  ;;  %v2460_v16 = vpop.permute.xlu1 %464  ;;  %vm379_vm13 = vcmp.eq.s32.totalorder %v2483_v35, %v2457_v13 }
  0xa0   : > { %491 = vperm.xlu1 %2131, %v450_v12   ;;  %vm505_vm11 = vcmp.eq.s32.totalorder %v2483_v35, %v2460_v16  ;;  %v1696_v2 = vsel %vm379_vm13, 1.0, %v2231_v37 }
  0xa1   : > { %v1710_v59 = vsel %vm505_vm11, 1.0, %v2231_v37 }
  0xa2   : > { %v2463_v18 = vpop.permute.xlu0 %345  ;;  %v553_v6 = vadd.f32 %v1710_v59, %v1694_v58 }
  0xa4   : > { %494 = vperm.xlu1 %2131, %v451_v15   ;;  %v2465_v21 = vpop.permute.xlu1 %583 }
  0xa5   : > { %vm630_vm14 = vcmp.eq.s32.totalorder %v2483_v35, %v2465_v21 }
  0xa6   : > { %v2467_v22 = vpop.permute.xlu0 %354  ;;  %v1723_v3 = vsel %vm630_vm14, 1.0, %v2231_v37 }
  0xa7   : > { %v678_v10 = vadd.f32 %v1723_v3, %v550_v61 }
  0xa8   : > { %2133 = vset.pattern.permute.xlu1 %v2227_v0  ;;  %v2470_v23 = vpop.permute.xlu1 %589  ;;  %v580_v0 = vadd.s32 64, %v2373_v19 }
  0xa9   : > { %372 = vperm.xlu1 %2133, %v323_v60   ;;  %vm632_vm15 = vcmp.eq.s32.totalorder %v2483_v35, %v2470_v23 }
  0xaa   : > { %v358_v24 = vpop.permute.xlu0 %357  ;;  %v1725_v7 = vsel %vm632_vm15, 1.0, %v2231_v37 }
  0xab   : > { %vm384_vm0 = vcmp.eq.s32.totalorder %v2483_v35, %v358_v24 }
  0xac   : > { %v2472_v26 = vpop.permute.xlu1 %592  ;;  %v1701_v38 = vsel %vm384_vm0, 1.0, %v2231_v37  ;;  %vm380_vm0 = vcmp.eq.s32.totalorder %v2483_v35, %v2463_v18 }
  0xad   : > { %2135 = vset.pattern.permute.xlu1 %v2228_v5  ;;  %v1697_v9 = vsel %vm380_vm0, 1.0, %v2231_v37 }
  0xae   : > { %500 = vperm.xlu1 %2135, %v453_v25   ;;  %v2475_v27 = vpop.permute.xlu0 %366 }
  0xb1   : > { %v2477_v29 = vpop.permute.xlu1 %714 }
  0xb2   : > { %2136 = vset.pattern.permute.xlu1 %v2229_v14  ;;  %v370_v30 = vpop.permute.xlu0 %369  ;;  %v707_v14 = vadd.s32 96, %v2369_v17 }
  0xb3   : > { %619 = vperm.xlu1 %2136, %v578_v28   ;;  %vm388_vm1 = vcmp.eq.s32.totalorder %v2483_v35, %v370_v30 }
  0xb4   : > { %v1705_v17 = vsel %vm388_vm1, 1.0, %v2231_v37  ;;  %vm633_vm1 = vcmp.eq.s32.totalorder %v2483_v35, %v2472_v26 }
  0xb5   : > { %v2481_v31 = vpop.permute.xlu1 %717  ;;  %v1726_v11 = vsel %vm633_vm1, 1.0, %v2231_v37 }
  0xb6   : > { %vm760_vm4 = vcmp.eq.s32.totalorder %v2483_v35, %v2481_v31 }
  0xb7   : > { %v462_v33 = vpop.permute.xlu0 %461  ;;  %625 = vperm.xlu1 %2136, %v580_v0   ;;  %v1741_v21 = vsel %vm760_vm4, 1.0, %v2231_v37 }
  0xb8   : > { %vm504_vm9 = vcmp.eq.s32.totalorder %v2483_v35, %v462_v33 }
  0xb9   : > { %v1709_v56 = vsel %vm504_vm9, 1.0, %v2231_v37 }
  0xba   : > { %v2485_v5 = vpop.permute.xlu1 %339  ;;  %v552_v63 = vadd.f32 %v1709_v56, %v1693_v54 }
  0xbb   : > { %628 = vperm.xlu1 %2136, %v581_v34   ;;  %v2487_v36 = vpop.permute.xlu0 %473  ;;  %vm378_vm5 = vcmp.eq.s32.totalorder %v2483_v35, %v2485_v5 }
  0xbc   : > { %v680_v12 = vadd.f32 %v1725_v7, %v552_v63  ;;  %vm508_vm7 = vcmp.eq.s32.totalorder %v2483_v35, %v2487_v36  ;;  %v1695_v23 = vsel %vm378_vm5, 1.0, %v2231_v37 }
  0xbd   : > { %v1713_v30 = vsel %vm508_vm7, 1.0, %v2231_v37 }
  0xbe   : > { %v808_v32 = vadd.f32 %v1741_v21, %v680_v12 }
  0xbf   : > { %2138 = vset.pattern.permute.xlu1 %v2230_v20  ;;  %v2493_v39 = vpop.permute.xlu1 %467  ;;  %v486_v40 = vpop.permute.xlu0 %485 }
  0xc0   : > { %vm512_vm2 = vcmp.eq.s32.totalorder %v2483_v35, %v486_v40  ;;  %750 = vperm.xlu1 %2138, %v707_v14   ;;  %v556_v40 = vadd.f32 %v1713_v30, %v1697_v9 }
  0xc1   : > { %v1717_v42 = vsel %vm512_vm2, 1.0, %v2231_v37  ;;  %vm759_vm2 = vcmp.eq.s32.totalorder %v2483_v35, %v2477_v29  ;;  %v681_v29 = vadd.f32 %v1726_v11, %v553_v6 }
  0xc2   : > { %v2499_v43 = vadd.f32 %v1717_v42, %v1701_v38  ;;  %v1740_v16 = vsel %vm759_vm2, 1.0, %v2231_v37 }
  0xc3   : > { %v2502_v44 = vpop.permute.xlu1 %470  ;;  %v498_v45 = vpop.permute.xlu0 %497 }
  0xc4   : > { %vm516_vm3 = vcmp.eq.s32.totalorder %v2483_v35, %v498_v45  ;;  %753 = vperm.xlu1 %2138, %v708_v41   ;;  %vm507_vm6 = vcmp.eq.s32.totalorder %v2483_v35, %v2502_v44 }
  0xc5   : > { %v1721_v20 = vsel %vm516_vm3, 1.0, %v2231_v37  ;;  %vm506_vm3 = vcmp.eq.s32.totalorder %v2483_v35, %v2493_v39  ;;  %v1712_v24 = vsel %vm507_vm6, 1.0, %v2231_v37  ;;  %vm383_vm6 = vcmp.eq.s32.totalorder %v2483_v35, %v2467_v22 }
  0xc6   : > { %v2506_v46 = vadd.f32 %v1721_v20, %v1705_v17  ;;  %v1711_v15 = vsel %vm506_vm3, 1.0, %v2231_v37  ;;  %v555_v33 = vadd.f32 %v1712_v24, %v1696_v2 }
  0xc7   : > { %v554_v0 = vadd.f32 %v1711_v15, %v1695_v23 }
  0xc8   : > { %v587_v47 = vpop.permute.xlu0 %586  ;;  %v2508_v48 = vpop.permute.xlu1 %348 }
  0xc9   : > { %vm631_vm12 = vcmp.eq.s32.totalorder %v2483_v35, %v587_v47  ;;  %vm381_vm13 = vcmp.eq.s32.totalorder %v2483_v35, %v2508_v48 }
  0xca   : > { %v1724_v1 = vsel %vm631_vm12, 1.0, %v2231_v37  ;;  %v1698_v47 = vsel %vm381_vm13, 1.0, %v2231_v37 }
  0xcb   : > { %v679_v8 = vadd.f32 %v1724_v1, %v551_v62 }
  0xcc   : > { %v2510_v19 = vpop.permute.xlu0 %598 }
  0xcd   : > { %v2512_v49 = vpop.permute.xlu1 %476  ;;  %vm635_vm9 = vcmp.eq.s32.totalorder %v2483_v35, %v2510_v19  ;;  %v807_v28 = vadd.f32 %v1740_v16, %v679_v8  ;;  %v1700_v16 = vsel %vm383_vm6, 1.0, %v2231_v37 }
  0xce   : > { %vm509_vm11 = vcmp.eq.s32.totalorder %v2483_v35, %v2512_v49  ;;  %v1728_v5 = vsel %vm635_vm9, 1.0, %v2231_v37 }
  0xcf   : > { %v1714_v41 = vsel %vm509_vm11, 1.0, %v2231_v37  ;;  %v683_v44 = vadd.f32 %v1728_v5, %v555_v33 }
  0xd0   : > { %v2527_v50 = vpop.permute.xlu0 %610  ;;  %v557_v53 = vadd.f32 %v1714_v41, %v1698_v47 }
  0xd1   : > { %vm639_vm9 = vcmp.eq.s32.totalorder %v2483_v35, %v2527_v50 }
  0xd2   : > { %v596_v57 = vpop.permute.xlu1 %595  ;;  %v1732_v23 = vsel %vm639_vm9, 1.0, %v2231_v37 }
  0xd3   : > { %vm634_vm10 = vcmp.eq.s32.totalorder %v2483_v35, %v596_v57 }
  0xd4   : > { %v2546_v60 = vpop.permute.xlu0 %622  ;;  %v1727_v36 = vsel %vm634_vm10, 1.0, %v2231_v37 }
  0xd5   : > { %v682_v45 = vadd.f32 %v1727_v36, %v554_v0 }
  0xd6   : > { %v602_v4 = vpop.permute.xlu1 %601 }
  0xd7   : > { %vm636_vm14 = vcmp.eq.s32.totalorder %v2483_v35, %v602_v4 }
  0xd8   : > { %v1729_v19 = vsel %vm636_vm14, 1.0, %v2231_v37 }
  0xd9   : > { %v712_v13 = vpop.permute.xlu0 %711  ;;  %v684_v58 = vadd.f32 %v1729_v19, %v556_v40 }
  0xda   : > { %vm758_vm8 = vcmp.eq.s32.totalorder %v2483_v35, %v712_v13  ;;  %v605_v18 = vpop.permute.xlu1 %604 }
  0xdb   : > { %v1739_v25 = vsel %vm758_vm8, 1.0, %v2231_v37  ;;  %vm637_vm15 = vcmp.eq.s32.totalorder %v2483_v35, %v605_v18 }
  0xdc   : > { %v806_v26 = vadd.f32 %v1739_v25, %v678_v10  ;;  %v1730_v49 = vsel %vm637_vm15, 1.0, %v2231_v37 }
  0xdd   : > { %v721_v31 = vpop.permute.xlu0 %720  ;;  %v685_v59 = vadd.f32 %v1730_v49, %v557_v53 }
  0xde   : > { %vm761_vm12 = vcmp.eq.s32.totalorder %v2483_v35, %v721_v31  ;;  %v822_v34 = vpack.c.bf16 %v807_v28, %v806_v26 }
  0xdf   : > { %v1742_v14 = vsel %vm761_vm12, 1.0, %v2231_v37  ;;  %v727_v38 = vpop.permute.xlu1 %726 }
  0xe0   : > { %v809_v39 = vadd.f32 %v1742_v14, %v681_v29  ;;  %vm763_vm0 = vcmp.eq.s32.totalorder %v2483_v35, %v727_v38  ;;  %1951 = vmatprep.mubr.bf16.mxu0 %v822_v34 }
  0xe1   : > { %v1744_v42 = vsel %vm763_vm0, 1.0, %v2231_v37  ;;  %v724_v17 = vpop.permute.xlu0 %723 }
  0xe2   : > { %vm762_vm1 = vcmp.eq.s32.totalorder %v2483_v35, %v724_v17  ;;  %v823_v20 = vpack.c.bf16 %v809_v39, %v808_v32  ;;  %v811_v54 = vadd.f32 %v1744_v42, %v683_v44 }
  0xe3   : > { %v1743_v51 = vsel %vm762_vm1, 1.0, %v2231_v37  ;;  %v730_v52 = vpop.permute.xlu1 %729 }
  0xe4   : > { %v810_v55 = vadd.f32 %v1743_v51, %v682_v45  ;;  %vm764_vm2 = vcmp.eq.s32.totalorder %v2483_v35, %v730_v52  ;;  %1952 = vmatmul.mubr.bf16.vlgmr.msra.gmra.mxu0 %v823_v20 }
  0xe5   : > { %v1745_v56 = vsel %vm764_vm2, 1.0, %v2231_v37  ;;  %v733_v57 = vpop.permute.xlu0 %732  ;;  %vm387_vm2 = vcmp.eq.s32.totalorder %v2483_v35, %v2475_v27  ;;  %v2148_v27 = vld [vmem:[%s2823_s2] sm:$0xff]  }
  0xe6   : > { %vm765_vm3 = vcmp.eq.s32.totalorder %v2483_v35, %v733_v57  ;;  %v824_v48 = vpack.c.bf16 %v811_v54, %v810_v55  ;;  %v812_v62 = vadd.f32 %v1745_v56, %v684_v58  ;;  %v2147_v54 = vld [vmem:[%s2823_s2 + $0x8] sm:$0xff]  }
  0xe7   : > { %v1746_v61 = vsel %vm765_vm3, 1.0, %v2231_v37  ;;  %vm643_vm3 = vcmp.eq.s32.totalorder %v2483_v35, %v2546_v60  ;;  %1967 = vmatprep.subr.bf16.mxu1 %v2147_v54 }
  0xe8   : > { %v813_v63 = vadd.f32 %v1746_v61, %v685_v59  ;;  %1955 = vmatprep.mubr.bf16.mxu0 %v824_v48  ;;  %v352_v1 = vpop.permute.xlu1 %351  ;;  %v1736_v51 = vsel %vm643_vm3, 1.0, %v2231_v37  ;;  %1968 = vmatpush3.bf16.msra.mxu1 %v2147_v54  ;;  %v2157_v54 = vld [vmem:[%s2827_s6 + $0x38] sm:$0xff]  }
  0xe9   : > { %vm382_vm7 = vcmp.eq.s32.totalorder %v2483_v35, %v352_v1  ;;  %v736_v10 = vpop.permute.xlu0 %735  ;;  %1969 = vmatprep.subr.bf16.mxu1 %v2148_v27  ;;  %2019 = vmatprep.subr.bf16.mxu0 %v2157_v54 }
  0xea   : > { %v825_v2 = vpack.c.bf16 %v813_v63, %v812_v62  ;;  %v1699_v15 = vsel %vm382_vm7, 1.0, %v2231_v37  ;;  %vm766_vm11 = vcmp.eq.s32.totalorder %v2483_v35, %v736_v10  ;;  %2020 = vmatpush3.bf16.msra.mxu0 %v2157_v54 }
  0xeb   : > { %v1747_v28 = vsel %vm766_vm11, 1.0, %v2231_v37 }
  0xec   : > { %1956 = vmatmul.mubr.bf16.gmra.mxu0 %v825_v2  ;;  %1970 = vmatpush3.bf16.msra.mxu1 %v2148_v27  ;;  %v2158_v27 = vld [vmem:[%s2827_s6 + $0x30] sm:$0xff]  }
  0xed   : > { %v480_v3 = vpop.permute.xlu1 %479  ;;  %v745_v24 = vpop.permute.xlu0 %744  ;;  %2021 = vmatprep.subr.bf16.mxu0 %v2158_v27 }
  0xee   : > { %vm510_vm4 = vcmp.eq.s32.totalorder %v2483_v35, %v480_v3  ;;  %vm769_vm15 = vcmp.eq.s32.totalorder %v2483_v35, %v745_v24  ;;  %2022 = vmatpush3.bf16.msra.mxu0 %v2158_v27 }
  0xef   : > { %v1715_v11 = vsel %vm510_vm4, 1.0, %v2231_v37  ;;  %v1750_v14 = vsel %vm769_vm15, 1.0, %v2231_v37 }
  0xf0   : > { %v558_v18 = vadd.f32 %v1715_v11, %v1699_v15 }
  0xf1   : > { %v483_v4 = vpop.permute.xlu1 %482  ;;  %v748_v58 = vpop.permute.xlu0 %747 }
  0xf2   : > { %vm511_vm5 = vcmp.eq.s32.totalorder %v2483_v35, %v483_v4  ;;  %vm770_vm11 = vcmp.eq.s32.totalorder %v2483_v35, %v748_v58 }
  0xf3   : > { %v1716_v12 = vsel %vm511_vm5, 1.0, %v2231_v37 }
  0xf4   : > { %v559_v21 = vadd.f32 %v1716_v12, %v1700_v16 }
  0xf5   : > { %v757_v2 = vpop.permute.xlu0 %756 }
  0xf6   : > { %v361_v6 = vpop.permute.xlu1 %360  ;;  %v687_v31 = vadd.f32 %v1732_v23, %v559_v21 }
  0xf7   : > { %vm385_vm12 = vcmp.eq.s32.totalorder %v2483_v35, %v361_v6 }
  0xf8   : > { %v1702_v26 = vsel %vm385_vm12, 1.0, %v2231_v37 }
  0xfb   : > { %v489_v7 = vpop.permute.xlu1 %488 }
  0xfc   : > { %vm513_vm10 = vcmp.eq.s32.totalorder %v2483_v35, %v489_v7 }
  0xfd   : > { %v1718_v50 = vsel %vm513_vm10, 1.0, %v2231_v37 }
  0xfe   : > { %v561_v0 = vadd.f32 %v1718_v50, %v1702_v26 }
 0x100   : > { %v608_v8 = vpop.permute.xlu1 %607 }
 0x101   : > { %vm638_vm8 = vcmp.eq.s32.totalorder %v2483_v35, %v608_v8  ;;  %v1751_v8 = vsel %vm770_vm11, 1.0, %v2231_v37 }
 0x102   : > { %v1731_v22 = vsel %vm638_vm8, 1.0, %v2231_v37 }
 0x103   : > { %v686_v25 = vadd.f32 %v1731_v22, %v558_v18 }
 0x104   : > { %v614_v9 = vpop.permute.xlu1 %613 }
 0x105   : > { %vm640_vm14 = vcmp.eq.s32.totalorder %v2483_v35, %v614_v9  ;;  %v814_v34 = vadd.f32 %v1747_v28, %v686_v25  ;;  %v2149_v25 = vld [vmem:[%s2825_s4 + $0x38] sm:$0xff]  }
 0x106   : > { %v1733_v32 = vsel %vm640_vm14, 1.0, %v2231_v37  ;;  %vm773_vm14 = vcmp.eq.s32.totalorder %v2483_v35, %v757_v2  ;;  %1987 = vmatprep.subr.bf16.mxu1 %v2149_v25 }
 0x107   : > { %v688_v39 = vadd.f32 %v1733_v32, %v2499_v43  ;;  %v1704_v43 = vsel %vm387_vm2, 1.0, %v2231_v37  ;;  %v1754_v18 = vsel %vm773_vm14, 1.0, %v2231_v37 }
 0x108   : > { %v617_v13 = vpop.permute.xlu1 %616 }
 0x109   : > { %vm641_vm13 = vcmp.eq.s32.totalorder %v2483_v35, %v617_v13 }
 0x10a   : > { %v1734_v29 = vsel %vm641_vm13, 1.0, %v2231_v37 }
 0x10b   : > { %v689_v5 = vadd.f32 %v1734_v29, %v561_v0 }
 0x10d   : > { %v739_v30 = vpop.permute.xlu1 %738  ;;  %v817_v42 = vadd.f32 %v1750_v14, %v689_v5  ;;  %v2152_v14 = vld [vmem:[%s2825_s4 + $0x20] sm:$0xff]  }
 0x10e   : > { %vm767_vm0 = vcmp.eq.s32.totalorder %v2483_v35, %v739_v30 }
 0x10f   : > { %v1748_v33 = vsel %vm767_vm0, 1.0, %v2231_v37  ;;  %vm1022_vm0 = vcmask 261120  }
 0x110   : > { %v815_v36 = vadd.f32 %v1748_v33, %v687_v31  ;;  %v2151_v33 = vld [vmem:[%s2825_s4 + $0x28] sm:$0xff]  }
 0x111   : > { %v742_v38 = vpop.permute.xlu1 %741 }
 0x112   : > { %vm768_vm1 = vcmp.eq.s32.totalorder %v2483_v35, %v742_v38  ;;  %v826_v40 = vpack.c.bf16 %v815_v36, %v814_v34  ;;  %v2153_v38 = vld [vmem:[%s2825_s4 + $0x18] sm:$0xff]  }
 0x113   : > { %v1749_v41 = vsel %vm768_vm1, 1.0, %v2231_v37 }
 0x114   : > { %v816_v17 = vadd.f32 %v1749_v41, %v688_v39  ;;  %1959 = vmatprep.mubr.bf16.mxu0 %v826_v40 }
 0x116   : > { %v364_v44 = vpop.permute.xlu1 %363  ;;  %v827_v45 = vpack.c.bf16 %v817_v42, %v816_v17 }
 0x117   : > { %vm386_vm6 = vcmp.eq.s32.totalorder %v2483_v35, %v364_v44 }
 0x118   : > { %1960 = vmatmul.mubr.bf16.gmra.mxu0 %v827_v45  ;;  %v1703_v48 = vsel %vm386_vm6, 1.0, %v2231_v37  ;;  %v2154_v45 = vld [vmem:[%s2825_s4 + $0x10] sm:$0xff]  }
 0x11b   : > { %v492_v20 = vpop.permute.xlu1 %491 }
 0x11c   : > { %vm514_vm5 = vcmp.eq.s32.totalorder %v2483_v35, %v492_v20  ;;  %v2155_v20 = vld [vmem:[%s2825_s4 + $0x8] sm:$0xff]  }
 0x11d   : > { %v1719_v57 = vsel %vm514_vm5, 1.0, %v2231_v37 }
 0x11e   : > { %v562_v62 = vadd.f32 %v1719_v57, %v1703_v48 }
 0x11f   : > { %v495_v47 = vpop.permute.xlu1 %494 }
 0x120   : > { %vm515_vm4 = vcmp.eq.s32.totalorder %v2483_v35, %v495_v47  ;;  %v2156_v47 = vld [vmem:[%s2825_s4] sm:$0xff]  }
 0x121   : > { %v1720_v19 = vsel %vm515_vm4, 1.0, %v2231_v37 }
 0x122   : > { %v563_v49 = vadd.f32 %v1720_v19, %v1704_v43 }
 0x124   : > { %v373_v52 = vpop.permute.xlu1 %372  ;;  %v691_v53 = vadd.f32 %v1736_v51, %v563_v49 }
 0x125   : > { %vm389_vm9 = vcmp.eq.s32.totalorder %v2483_v35, %v373_v52 }
 0x126   : > { %v1706_v3 = vsel %vm389_vm9, 1.0, %v2231_v37 }
 0x129   : > { %v501_v60 = vpop.permute.xlu1 %500 }
 0x12a   : > { %vm517_vm8 = vcmp.eq.s32.totalorder %v2483_v35, %v501_v60  ;;  %v2159_v60 = vld [vmem:[%s2827_s6 + $0x28] sm:$0xff]  }
 0x12b   : > { %v1722_v63 = vsel %vm517_vm8, 1.0, %v2231_v37  ;;  %2023 = vmatprep.subr.bf16.mxu0 %v2159_v60 }
 0x12c   : > { %v565_v7 = vadd.f32 %v1722_v63, %v1706_v3  ;;  %2024 = vmatpush3.bf16.msra.mxu0 %v2159_v60 }
 0x12e   : > { %v620_v55 = vpop.permute.xlu1 %619 }
 0x12f   : > { %vm642_vm7 = vcmp.eq.s32.totalorder %v2483_v35, %v620_v55  ;;  %v2160_v55 = vld [vmem:[%s2827_s6 + $0x20] sm:$0xff]  }
 0x130   : > { %v1735_v61 = vsel %vm642_vm7, 1.0, %v2231_v37  ;;  %2025 = vmatprep.subr.bf16.mxu0 %v2160_v55 }
 0x131   : > { %v690_v1 = vadd.f32 %v1735_v61, %v562_v62  ;;  %2026 = vmatpush3.bf16.msra.mxu0 %v2160_v55 }
 0x132   : > { %v626_v56 = vpop.permute.xlu1 %625 }
 0x133   : > { %vm644_vm12 = vcmp.eq.s32.totalorder %v2483_v35, %v626_v56  ;;  %v818_v11 = vadd.f32 %v1751_v8, %v690_v1  ;;  %v2161_v56 = vld [vmem:[%s2827_s6 + $0x18] sm:$0xff]  }
 0x134   : > { %v1737_v9 = vsel %vm644_vm12, 1.0, %v2231_v37  ;;  %2027 = vmatprep.subr.bf16.mxu0 %v2161_v56 }
 0x135   : > { %v692_v15 = vadd.f32 %v1737_v9, %v2506_v46  ;;  %2028 = vmatpush3.bf16.msra.mxu0 %v2161_v56 }
 0x136   : > { %v629_v59 = vpop.permute.xlu1 %628 }
 0x137   : > { %vm645_vm10 = vcmp.eq.s32.totalorder %v2483_v35, %v629_v59  ;;  %v2724_v59 = vld [vmem:[%s2824_s3] ss:$0 sm:$0xff] }
 0x138   : > { %v1738_v4 = vsel %vm645_vm10, 1.0, %v2231_v37 }
 0x139   : > { %v693_v12 = vadd.f32 %v1738_v4, %v565_v7 }
 0x13b   : > { %v751_v6 = vpop.permute.xlu1 %750  ;;  %v821_v23 = vadd.f32 %v1754_v18, %v693_v12 }
 0x13c   : > { %vm771_vm13 = vcmp.eq.s32.totalorder %v2483_v35, %v751_v6 }
 0x13d   : > { %v1752_v10 = vsel %vm771_vm13, 1.0, %v2231_v37 }
 0x13e   : > { %v819_v13 = vadd.f32 %v1752_v10, %v691_v53 }
 0x13f   : > { %v754_v16 = vpop.permute.xlu1 %753 }
 0x140   : > { %vm772_vm15 = vcmp.eq.s32.totalorder %v2483_v35, %v754_v16  ;;  %v828_v22 = vpack.c.bf16 %v819_v13, %v818_v11 }
 0x141   : > { %v1753_v21 = vsel %vm772_vm15, 1.0, %v2231_v37  ;;  %v2150_v37 = vld [vmem:[%s2825_s4 + $0x30] sm:$0xff]  }
 0x142   : > { %v820_v50 = vadd.f32 %v1753_v21, %v692_v15  ;;  %1963 = vmatprep.mubr.bf16.mxu0 %v828_v22 }
 0x144   : > { %v829_v24 = vpack.c.bf16 %v821_v23, %v820_v50 }
 0x146   : > { %1964 = vmatmul.mubr.bf16.gmra.mxu0 %v829_v24 }
 0x1a4   : > { %v1953_v26 = vpop.f32.mrf.mxu0 }
 0x1a6   : > { %v928_v28 = vpop.f32.mrf.mxu0 }
 0x1a8   : > { %v1954_v46 = vpop.f32.mrf.mxu0 }
 0x1a9   : > { %v992_v30 = vpack.c.bf16 %v1954_v46, %v1953_v26 }
 0x1aa   : > { %v931_v29 = vpop.f32.mrf.mxu0 }
 0x1ab   : > { %v991_v35 = vpack.c.bf16 %v931_v29, %v928_v28 }
 0x1ac   : > { %v1957_v0 = vpop.f32.mrf.mxu0 }
 0x1ad   : > { %1971 = vmatprep.mubr.msk.bf16.mxu1 %vm1022_vm0, %v991_v35 }
 0x1ae   : > { %v944_v31 = vpop.f32.mrf.mxu0  ;;  %1972 = vmatmul.mubr.msk.bf16.vlgmr.msra.gmra.mxu1 %vm1022_vm0, %v992_v30 }
 0x1af   : > { %1988 = vmatpush3.bf16.msra.mxu1 %v2149_v25 }
 0x1b0   : > { %v1958_v32 = vpop.f32.mrf.mxu0  ;;  %1989 = vmatprep.subr.bf16.mxu1 %v2150_v37 }
 0x1b1   : > { %v994_v36 = vpack.c.bf16 %v1958_v32, %v1957_v0 }
 0x1b2   : > { %v947_v34 = vpop.f32.mrf.mxu0 }
 0x1b3   : > { %v993_v5 = vpack.c.bf16 %v947_v34, %v944_v31  ;;  %1990 = vmatpush3.bf16.msra.mxu1 %v2150_v37 }
 0x1b4   : > { %1991 = vmatprep.subr.bf16.mxu1 %v2151_v33 }
 0x1b5   : > { %1975 = vmatprep.mubr.msk.bf16.mxu1 %vm1022_vm0, %v993_v5 }
 0x1b6   : > { %1976 = vmatmul.mubr.msk.bf16.gmra.mxu1 %vm1022_vm0, %v994_v36 }
 0x1b7   : > { %1992 = vmatpush3.bf16.msra.mxu1 %v2151_v33 }
 0x1b8   : > { %1993 = vmatprep.subr.bf16.mxu1 %v2152_v14 }
 0x1bb   : > { %1994 = vmatpush3.bf16.msra.mxu1 %v2152_v14 }
 0x1bc   : > { %1995 = vmatprep.subr.bf16.mxu1 %v2153_v38 }
 0x1bf   : > { %1996 = vmatpush3.bf16.msra.mxu1 %v2153_v38  ;;  %v2162_v38 = vld [vmem:[%s2827_s6 + $0x10] sm:$0xff]  }
 0x1c0   : > { %1997 = vmatprep.subr.bf16.mxu1 %v2154_v45  ;;  %2029 = vmatprep.subr.bf16.mxu0 %v2162_v38 }
 0x1c1   : > { %2030 = vmatpush3.bf16.msra.mxu0 %v2162_v38 }
 0x1c3   : > { %1998 = vmatpush3.bf16.msra.mxu1 %v2154_v45 }
 0x1c4   : > { %1999 = vmatprep.subr.bf16.mxu1 %v2155_v20 }
 0x1c7   : > { %2000 = vmatpush3.bf16.msra.mxu1 %v2155_v20 }
 0x1c8   : > { %2001 = vmatprep.subr.bf16.mxu1 %v2156_v47 }
 0x1cb   : > { %2002 = vmatpush3.bf16.msra.mxu1 %v2156_v47 }
 0x1cc   : > { %2051 = vmatprep.subr.bf16.mxu1 %v2157_v54 }
 0x1d8   : > { %v1961_v39 = vpop.f32.mrf.mxu0 }
 0x1da   : > { %v960_v40 = vpop.f32.mrf.mxu0 }
 0x1dc   : > { %v1962_v41 = vpop.f32.mrf.mxu0 }
 0x1dd   : > { %v996_v44 = vpack.c.bf16 %v1962_v41, %v1961_v39  ;;  %v2163_v39 = vld [vmem:[%s2827_s6 + $0x8] sm:$0xff]  }
 0x1de   : > { %v963_v42 = vpop.f32.mrf.mxu0  ;;  %2031 = vmatprep.subr.bf16.mxu0 %v2163_v39 }
 0x1df   : > { %v995_v17 = vpack.c.bf16 %v963_v42, %v960_v40  ;;  %2032 = vmatpush3.bf16.msra.mxu0 %v2163_v39  ;;  %v2164_v40 = vld [vmem:[%s2827_s6] sm:$0xff]  }
 0x1e0   : > { %2033 = vmatprep.subr.bf16.mxu0 %v2164_v40 }
 0x1e1   : > { %1979 = vmatprep.mubr.msk.bf16.mxu1 %vm1022_vm0, %v995_v17 }
 0x1e2   : > { %1980 = vmatmul.mubr.msk.bf16.gmra.mxu1 %vm1022_vm0, %v996_v44 }
 0x1e3   : > { %2034 = vmatpush3.bf16.msra.mxu0 %v2164_v40 }
 0x206   : > { %v1965_v43 = vpop.f32.mrf.mxu0 }
 0x208   : > { %v976_v19 = vpop.f32.mrf.mxu0 }
 0x20a   : > { %v1966_v49 = vpop.f32.mrf.mxu0 }
 0x20b   : > { %v998_v53 = vpack.c.bf16 %v1966_v49, %v1965_v43 }
 0x20c   : > { %v979_v51 = vpop.f32.mrf.mxu0 }
 0x20d   : > { %v997_v52 = vpack.c.bf16 %v979_v51, %v976_v19 }
 0x20f   : > { %1983 = vmatprep.mubr.msk.bf16.mxu1 %vm1022_vm0, %v997_v52 }
 0x210   : > { %1984 = vmatmul.mubr.msk.bf16.gmra.mxu1 %vm1022_vm0, %v998_v53 }
 0x26e   : > { %v1973_v57 = vpop.f32.mrf.mxu1 }
 0x26f   : > { %v1090_v63 = vadd.f32 %v1973_v57, %v2724_v59 }
 0x270   : > { %v1081_v58 = vpop.f32.mrf.mxu1 }
 0x271   : > { %v1082_v61 = vadd.f32 %v2724_v59, %v1081_v58  ;;  %v1146_v8 = vmax.f32 %v1090_v63, 0.0 }
 0x272   : > { %v1974_v48 = vpop.f32.mrf.mxu1 }
 0x273   : > { %v1093_v62 = vadd.f32 %v1974_v48, %v2724_v59  ;;  %v1144_v6 = vmax.f32 %v1082_v61, 0.0 }
 0x274   : > { %v1084_v1 = vpop.f32.mrf.mxu1 }
 0x275   : > { %v1085_v2 = vadd.f32 %v2724_v59, %v1084_v1  ;;  %v1147_v3 = vmax.f32 %v1093_v62, 0.0 }
 0x276   : > { %v1977_v4 = vpop.f32.mrf.mxu1 }
 0x277   : > { %v1145_v7 = vmax.f32 %v1085_v2, 0.0  ;;  %v1161_v11 = vpack.c.bf16 %v1147_v3, %v1146_v8  ;;  %v1106_v15 = vadd.f32 %v1977_v4, %v2724_v59 }
 0x278   : > { %v1097_v9 = vpop.f32.mrf.mxu1 }
 0x279   : > { %v1160_v10 = vpack.c.bf16 %v1145_v7, %v1144_v6  ;;  %v1098_v13 = vadd.f32 %v2724_v59, %v1097_v9  ;;  %v1150_v24 = vmax.f32 %v1106_v15, 0.0 }
 0x27a   : > { %v1978_v12 = vpop.f32.mrf.mxu1 }
 0x27b   : > { %v1109_v16 = vadd.f32 %v1978_v12, %v2724_v59  ;;  %2003 = vmatprep.mubr.bf16.mxu1 %v1160_v10  ;;  %v1148_v23 = vmax.f32 %v1098_v13, 0.0 }
 0x27c   : > { %v1100_v22 = vpop.f32.mrf.mxu1  ;;  %2004 = vmatmul.mubr.bf16.vlgmr.msra.gmra.mxu1 %v1161_v11 }
 0x27d   : > { %v1101_v18 = vadd.f32 %v2724_v59, %v1100_v22  ;;  %2059 = vmatpush3.bf16.msra.mxu1 %v2157_v54  ;;  %v1151_v21 = vmax.f32 %v1109_v16, 0.0 }
 0x27e   : > { %2052 = vmatprep.subr.bf16.mxu1 %v2158_v27 }
 0x27f   : > { %v1149_v50 = vmax.f32 %v1101_v18, 0.0  ;;  %v1163_v26 = vpack.c.bf16 %v1151_v21, %v1150_v24 }
 0x281   : > { %v1162_v25 = vpack.c.bf16 %v1149_v50, %v1148_v23  ;;  %2060 = vmatpush3.bf16.msra.mxu1 %v2158_v27 }
 0x282   : > { %2053 = vmatprep.subr.bf16.mxu1 %v2159_v60 }
 0x283   : > { %2007 = vmatprep.mubr.bf16.mxu1 %v1162_v25 }
 0x284   : > { %2008 = vmatmul.mubr.bf16.gmra.mxu1 %v1163_v26 }
 0x285   : > { %2061 = vmatpush3.bf16.msra.mxu1 %v2159_v60 }
 0x286   : > { %2054 = vmatprep.subr.bf16.mxu1 %v2160_v55 }
 0x289   : > { %2062 = vmatpush3.bf16.msra.mxu1 %v2160_v55  ;;  %v1774_v55 = vld [vmem:[%s2826_s5] ss:$0 sm:$0xff] }
 0x28a   : > { %2055 = vmatprep.subr.bf16.mxu1 %v2161_v56 }
 0x28d   : > { %2063 = vmatpush3.bf16.msra.mxu1 %v2161_v56 }
 0x28e   : > { %2056 = vmatprep.subr.bf16.mxu1 %v2162_v38 }
 0x291   : > { %2064 = vmatpush3.bf16.msra.mxu1 %v2162_v38 }
 0x292   : > { %2057 = vmatprep.subr.bf16.mxu1 %v2163_v39 }
 0x295   : > { %2065 = vmatpush3.bf16.msra.mxu1 %v2163_v39 }
 0x296   : > { %2058 = vmatprep.subr.bf16.mxu1 %v2164_v40 }
 0x299   : > { %2066 = vmatpush3.bf16.msra.mxu1 %v2164_v40 }
 0x2a2   : > { %v1981_v28 = vpop.f32.mrf.mxu1 }
 0x2a3   : > { %v1122_v0 = vadd.f32 %v1981_v28, %v2724_v59 }
 0x2a4   : > { %v1113_v46 = vpop.f32.mrf.mxu1 }
 0x2a5   : > { %v1114_v35 = vadd.f32 %v2724_v59, %v1113_v46  ;;  %v1154_v5 = vmax.f32 %v1122_v0, 0.0 }
 0x2a6   : > { %v1982_v29 = vpop.f32.mrf.mxu1 }
 0x2a7   : > { %v1125_v30 = vadd.f32 %v1982_v29, %v2724_v59  ;;  %v1152_v33 = vmax.f32 %v1114_v35, 0.0 }
 0x2a8   : > { %v1116_v37 = vpop.f32.mrf.mxu1 }
 0x2a9   : > { %v1117_v31 = vadd.f32 %v2724_v59, %v1116_v37  ;;  %v1155_v32 = vmax.f32 %v1125_v30, 0.0 }
 0x2ab   : > { %v1153_v34 = vmax.f32 %v1117_v31, 0.0  ;;  %v1165_v14 = vpack.c.bf16 %v1155_v32, %v1154_v5 }
 0x2ad   : > { %v1164_v36 = vpack.c.bf16 %v1153_v34, %v1152_v33 }
 0x2af   : > { %2011 = vmatprep.mubr.bf16.mxu1 %v1164_v36 }
 0x2b0   : > { %2012 = vmatmul.mubr.bf16.gmra.mxu1 %v1165_v14 }
 0x2d0   : > { %v1985_v41 = vpop.f32.mrf.mxu1 }
 0x2d1   : > { %v1138_v20 = vadd.f32 %v1985_v41, %v2724_v59 }
 0x2d2   : > { %v1129_v42 = vpop.f32.mrf.mxu1 }
 0x2d3   : > { %v1130_v44 = vadd.f32 %v2724_v59, %v1129_v42  ;;  %v1158_v52 = vmax.f32 %v1138_v20, 0.0 }
 0x2d4   : > { %v1986_v17 = vpop.f32.mrf.mxu1 }
 0x2d5   : > { %v1141_v45 = vadd.f32 %v1986_v17, %v2724_v59  ;;  %v1156_v49 = vmax.f32 %v1130_v44, 0.0 }
 0x2d6   : > { %v1132_v47 = vpop.f32.mrf.mxu1 }
 0x2d7   : > { %v1133_v43 = vadd.f32 %v2724_v59, %v1132_v47  ;;  %v1159_v19 = vmax.f32 %v1141_v45, 0.0 }
 0x2d9   : > { %v1157_v51 = vmax.f32 %v1133_v43, 0.0  ;;  %v1167_v54 = vpack.c.bf16 %v1159_v19, %v1158_v52  ;;  %v1783_v19 = vld [vmem:[%s2828_s7] ss:$0 sm:$0xff] }
 0x2db   : > { %v1166_v53 = vpack.c.bf16 %v1157_v51, %v1156_v49 }
 0x2dd   : > { %2015 = vmatprep.mubr.bf16.mxu1 %v1166_v53 }
 0x2de   : > { %2016 = vmatmul.mubr.bf16.gmra.mxu1 %v1167_v54 }
 0x33c   : > { %v2005_v27 = vpop.f32.mrf.mxu1 }
 0x33d   : > { %v1282_v48 = vadd.f32 %v2005_v27, %v1774_v55 }
 0x33e   : > { %v1273_v60 = vpop.f32.mrf.mxu1 }
 0x33f   : > { %v1274_v57 = vadd.f32 %v1774_v55, %v1273_v60  ;;  %v1338_v3 = vmax.f32 %v1282_v48, 0.0 }
 0x340   : > { %v2006_v56 = vpop.f32.mrf.mxu1 }
 0x341   : > { %v1285_v58 = vadd.f32 %v2006_v56, %v1774_v55  ;;  %v1336_v1 = vmax.f32 %v1274_v57, 0.0 }
 0x342   : > { %v1276_v61 = vpop.f32.mrf.mxu1 }
 0x343   : > { %v1277_v59 = vadd.f32 %v1774_v55, %v1276_v61  ;;  %v1339_v62 = vmax.f32 %v1285_v58, 0.0 }
 0x344   : > { %v2009_v63 = vpop.f32.mrf.mxu1 }
 0x345   : > { %v1337_v2 = vmax.f32 %v1277_v59, 0.0  ;;  %v1353_v7 = vpack.c.bf16 %v1339_v62, %v1338_v3  ;;  %v1298_v11 = vadd.f32 %v2009_v63, %v1774_v55 }
 0x346   : > { %v1289_v4 = vpop.f32.mrf.mxu1 }
 0x347   : > { %v1352_v6 = vpack.c.bf16 %v1337_v2, %v1336_v1  ;;  %v1290_v9 = vadd.f32 %v1774_v55, %v1289_v4  ;;  %v1342_v18 = vmax.f32 %v1298_v11, 0.0 }
 0x348   : > { %v2010_v8 = vpop.f32.mrf.mxu1 }
 0x349   : > { %v1301_v10 = vadd.f32 %v2010_v8, %v1774_v55  ;;  %2035 = vmatprep.mubr.bf16.mxu0 %v1352_v6  ;;  %v1340_v15 = vmax.f32 %v1290_v9, 0.0 }
 0x34a   : > { %v1292_v12 = vpop.f32.mrf.mxu1  ;;  %2036 = vmatmul.mubr.bf16.vlgmr.msra.gmra.mxu0 %v1353_v7 }
 0x34b   : > { %v1293_v13 = vadd.f32 %v1774_v55, %v1292_v12  ;;  %v1343_v16 = vmax.f32 %v1301_v10, 0.0 }
 0x34d   : > { %v1341_v22 = vmax.f32 %v1293_v13, 0.0  ;;  %v1355_v23 = vpack.c.bf16 %v1343_v16, %v1342_v18 }
 0x34f   : > { %v1354_v21 = vpack.c.bf16 %v1341_v22, %v1340_v15 }
 0x351   : > { %2039 = vmatprep.mubr.bf16.mxu0 %v1354_v21 }
 0x352   : > { %2040 = vmatmul.mubr.bf16.gmra.mxu0 %v1355_v23 }
 0x370   : > { %v2013_v50 = vpop.f32.mrf.mxu1 }
 0x371   : > { %v1314_v46 = vadd.f32 %v2013_v50, %v1774_v55 }
 0x372   : > { %v1305_v24 = vpop.f32.mrf.mxu1 }
 0x373   : > { %v1306_v26 = vadd.f32 %v1774_v55, %v1305_v24  ;;  %v1346_v31 = vmax.f32 %v1314_v46, 0.0 }
 0x374   : > { %v2014_v25 = vpop.f32.mrf.mxu1 }
 0x375   : > { %v1317_v28 = vadd.f32 %v2014_v25, %v1774_v55  ;;  %v1344_v0 = vmax.f32 %v1306_v26, 0.0 }
 0x376   : > { %v1308_v29 = vpop.f32.mrf.mxu1 }
 0x377   : > { %v1309_v35 = vadd.f32 %v1774_v55, %v1308_v29  ;;  %v1347_v30 = vmax.f32 %v1317_v28, 0.0 }
 0x379   : > { %v1345_v37 = vmax.f32 %v1309_v35, 0.0  ;;  %v1357_v33 = vpack.c.bf16 %v1347_v30, %v1346_v31 }
 0x37b   : > { %v1356_v32 = vpack.c.bf16 %v1345_v37, %v1344_v0 }
 0x37d   : > { %2043 = vmatprep.mubr.bf16.mxu0 %v1356_v32 }
 0x37e   : > { %2044 = vmatmul.mubr.bf16.gmra.mxu0 %v1357_v33 }
 0x39e   : > { %v2017_v34 = vpop.f32.mrf.mxu1 }
 0x39f   : > { %v1330_v39 = vadd.f32 %v2017_v34, %v1774_v55 }
 0x3a0   : > { %v1321_v5 = vpop.f32.mrf.mxu1 }
 0x3a1   : > { %v1322_v14 = vadd.f32 %v1774_v55, %v1321_v5  ;;  %v1350_v45 = vmax.f32 %v1330_v39, 0.0 }
 0x3a2   : > { %v2018_v36 = vpop.f32.mrf.mxu1 }
 0x3a3   : > { %v1333_v38 = vadd.f32 %v2018_v36, %v1774_v55  ;;  %v1348_v17 = vmax.f32 %v1322_v14, 0.0 }
 0x3a4   : > { %v1324_v40 = vpop.f32.mrf.mxu1 }
 0x3a5   : > { %v1325_v41 = vadd.f32 %v1774_v55, %v1324_v40  ;;  %v1351_v42 = vmax.f32 %v1333_v38, 0.0 }
 0x3a7   : > { %v1349_v44 = vmax.f32 %v1325_v41, 0.0  ;;  %v1359_v47 = vpack.c.bf16 %v1351_v42, %v1350_v45 }
 0x3a9   : > { %v1358_v20 = vpack.c.bf16 %v1349_v44, %v1348_v17 }
 0x3ab   : > { %2047 = vmatprep.mubr.bf16.mxu1 %v1358_v20 }
 0x3ac   : > { %2048 = vmatmul.mubr.bf16.vlgmr.msra.gmra.mxu1 %v1359_v47 }
 0x40a   : > { %v2037_v43 = vpop.f32.mrf.mxu0 }
 0x40b   : > { %v1474_v52 = vadd.f32 %v2037_v43, %v1783_v19 }
 0x40c   : > { %v1465_v49 = vpop.f32.mrf.mxu0 }
 0x40d   : > { %v1466_v27 = vadd.f32 %v1783_v19, %v1465_v49 }
 0x40e   : > { %v2038_v51 = vpop.f32.mrf.mxu0 }
 0x40f   : > { %v1477_v53 = vadd.f32 %v2038_v51, %v1783_v19 }
 0x410   : > { %v1468_v54 = vpop.f32.mrf.mxu0 }
 0x411   : > { %v1838_v60 = vpack.c.bf16 %v1477_v53, %v1474_v52  ;;  %v1469_v55 = vadd.f32 %v1783_v19, %v1468_v54 }
 0x412   : > { %v2041_v56 = vpop.f32.mrf.mxu0 }
 0x413   : > { %1870 = vst [vmem:[%s2760_s17 + $0x8] sm:$0xff] %v1838_v60   ;;  %v1833_v57 = vpack.c.bf16 %v1469_v55, %v1466_v27  ;;  %v1490_v61 = vadd.f32 %v2041_v56, %v1783_v19 }
 0x414   : > { %v1481_v58 = vpop.f32.mrf.mxu0 }
 0x415   : > { %1834 = vst [vmem:[%s2760_s17] sm:$0xff] %v1833_v57   ;;  %v1482_v63 = vadd.f32 %v1783_v19, %v1481_v58 }
 0x416   : > { %v2042_v48 = vpop.f32.mrf.mxu0 }
 0x417   : > { %v1493_v59 = vadd.f32 %v2042_v48, %v1783_v19 }
 0x418   : > { %v1484_v62 = vpop.f32.mrf.mxu0 }
 0x419   : > { %v1848_v1 = vpack.c.bf16 %v1493_v59, %v1490_v61  ;;  %v1485_v2 = vadd.f32 %v1783_v19, %v1484_v62 }
 0x41b   : > { %1872 = vst [vmem:[%s2760_s17 + $0x18] sm:$0xff] %v1848_v1   ;;  %v1843_v3 = vpack.c.bf16 %v1485_v2, %v1482_v63 }
 0x41d   : > { %1871 = vst [vmem:[%s2760_s17 + $0x10] sm:$0xff] %v1843_v3  }
 0x43e   : > { %v2045_v4 = vpop.f32.mrf.mxu0 }
 0x43f   : > { %v1506_v8 = vadd.f32 %v2045_v4, %v1783_v19 }
 0x440   : > { %v1497_v6 = vpop.f32.mrf.mxu0 }
 0x441   : > { %v1498_v11 = vadd.f32 %v1783_v19, %v1497_v6 }
 0x442   : > { %v2046_v7 = vpop.f32.mrf.mxu0 }
 0x443   : > { %v1509_v9 = vadd.f32 %v2046_v7, %v1783_v19 }
 0x444   : > { %v1500_v10 = vpop.f32.mrf.mxu0 }
 0x445   : > { %v1858_v12 = vpack.c.bf16 %v1509_v9, %v1506_v8  ;;  %v1501_v13 = vadd.f32 %v1783_v19, %v1500_v10 }
 0x447   : > { %1874 = vst [vmem:[%s2760_s17 + $0x28] sm:$0xff] %v1858_v12   ;;  %v1853_v16 = vpack.c.bf16 %v1501_v13, %v1498_v11 }
 0x449   : > { %1873 = vst [vmem:[%s2760_s17 + $0x20] sm:$0xff] %v1853_v16  }
 0x46c   : > { %v2049_v15 = vpop.f32.mrf.mxu1 }
 0x46d   : > { %v1522_v21 = vadd.f32 %v2049_v15, %v1783_v19 }
 0x46e   : > { %v1513_v22 = vpop.f32.mrf.mxu1 }
 0x46f   : > { %v1514_v24 = vadd.f32 %v1783_v19, %v1513_v22 }
 0x470   : > { %v2050_v18 = vpop.f32.mrf.mxu1 }
 0x471   : > { %v1525_v23 = vadd.f32 %v2050_v18, %v1783_v19 }
 0x472   : > { %v1516_v50 = vpop.f32.mrf.mxu1 }
 0x473   : > { %v1868_v25 = vpack.c.bf16 %v1525_v23, %v1522_v21  ;;  %v1517_v26 = vadd.f32 %v1783_v19, %v1516_v50 }
 0x475   : > { %1876 = vst [vmem:[%s2760_s17 + $0x38] sm:$0xff] %v1868_v25   ;;  %v1863_v28 = vpack.c.bf16 %v1517_v26, %v1514_v24 }
 0x477   : > { %1875 = vst [vmem:[%s2760_s17 + $0x30] sm:$0xff] %v1863_v28  }
 0x478   : > { %2178 = shalt.err (!%p2175_p3)
}
 0x479   : > { %s2179_s26 = scalar_lea.hbm %s2773_s23, 1024  ;;  %s2183_s17 = scalar_lea.hbm %s2829_s8, 2048 }
 0x47a   : > { %p2180_p4 = scmp.ne.s32.totalorder %s2773_s23, %s2179_s26  ;;  %p2184_p9 = scmp.lt.s32.totalorder %s2773_s23, %s2829_s8 }
 0x47b   : > { %p2185_p10 = scmp.lt.s32.totalorder %s2183_s17, %s2179_s26 }
 0x47c   : > { %p2181_p7 = pnand %p2180_p4, %p2318_p5 }
 0x47d   : > { %p2186_p11 = por %p2185_p10, %p2184_p9 }
 0x47e   : > { %p2182_p8 = pneg %p2181_p7 }
 0x480   : > { %p2187_p12 = pnand %p2186_p11, %p2182_p8 }
 0x482   : > { %2190 = shalt.err (!%p2187_p12)
}
 0x483   : > { %s2233_s22 = smov 64   ;;  %s2234_s24 = smov 4  }
 0x484   : > { %2067 = dma.vmem_to_hbm [thread:$0]  (%p2318_p5), %s2775_s19, 1024, %s2773_s23, %s2781_s9, %s2233_s22, %s2233_s22, %s2234_s24  }
 0x485 PF: > { %p2073_p13 = scmp.ge.s32.totalorder %s2225_s30, 2  ;;  %s1637_s25 = sand.u32 1, %s2213_s27  }
 0x486   : > { %s1638_s21 = scalar_lea.sflag [#allocation3], %s1637_s25 }
 0x487   : > { %p2070_p0 = pnand %p2073_p13, %p2322_p6 }
 0x489   : > { %p2071_p1 = pneg %p2070_p0 }
 0x48b   : > { %2208 = dma.done.wait (%p2071_p1), %s1638_s21, 1024  }
 0x48c   : > { %2210 = vsyncadd (%p2071_p1), %s1638_s21, 4294966272  ;;  %p18_p2 = scmp.ge.s32.totalorder %s2305_s11, 4   ;;  %s2832_s27 = smov %s2217_s28 }
 0x48d   : > { %s2833_s28 = smov %s2221_s29  ;;  %s2834_s29 = smov %s2316_s14 }
 0x48e   : > { %s2835_s30 = smov %s2305_s11  ;;  %20 = sbr.rel (!%p18_p2) target bundleno = 3 (0x3), region = 87 }
 0x493   :  { %1643 = vsyncpa [#allocation3], 1 }
 0x494   :  { %1645 = vsyncpa [#allocation3 + $0x1], 1 }

</bundles_post_ra>
